<compile_context>
chip_gen: v5e
topology: v5e:2x2
jax: 0.10.0
libtpu: 0.0.40
codegen_flags: <defaults>
</compile_context>

<pallas_src>
import math
import functools

import jax
import jax.numpy as jnp
from jax.experimental import pallas as pl
from jax.experimental.pallas import tpu as pltpu


def _softmax_rows(scores):
    """Numerically stable softmax over the last axis (f32 in, f32 out)."""
    m = jnp.max(scores, axis=-1, keepdims=True)
    e = jnp.exp(scores - m)
    denom = jnp.sum(e, axis=-1, keepdims=True)
    inv = pl.reciprocal(denom, approx=True)     # EUP slot (nearly free)
    inv = inv * (2.0 - denom * inv)             # one Newton step -> ~f32 exact
    return e * inv


def _attention_core(qp, kp, vp, wo_ref, bo_ref, o_ref, *, n_heads, d_k, cdt):
    """Per-head attention with the output projection fused into the head loop.

    qp/kp/vp: (rows, D) f32 projected activations (softmax scale already
    folded into Wq on the host).  Accumulating `ctx_h @ Wo[h*d_k:(h+1)*d_k, :]`
    per head avoids the (rows, D) ctx scratch and its masked 32-lane column
    stores entirely.
    """
    Bt, S, D = o_ref.shape
    rows = Bt * S
    qp3 = qp.reshape(Bt, S, D)
    kp3 = kp.reshape(Bt, S, D)
    vp3 = vp.reshape(Bt, S, D)

    out_acc = jnp.zeros((rows, D), jnp.float32)
    # TODO(synk): for large S, replace the materialized (Bt, S, S) scores with
    # a KV-tiled online-softmax (flash) accumulator; fine at these demo sizes.
    for h in range(n_heads):
        lo = h * d_k
        qh = qp3[:, :, lo:lo + d_k].astype(cdt)          # (Bt, S, d_k)
        kh = kp3[:, :, lo:lo + d_k].astype(cdt)
        vh = vp3[:, :, lo:lo + d_k].astype(cdt)

        # Contract the last axes directly (no K^T materialization).
        scores = jnp.einsum('bqd,bkd->bqk', qh, kh,
                            preferred_element_type=jnp.float32)  # (Bt, S, S)
        # TODO(synk): optional attention mask (mask == 0 -> -1e9) not wired in;
        # this matches the mask=None path of the PyTorch module.
        attn = _softmax_rows(scores)

        ctx_h = jnp.einsum('bqk,bkd->bqd', attn.astype(cdt), vh,
                           preferred_element_type=jnp.float32)   # (Bt, S, d_k)
        out_acc = out_acc + jnp.dot(
            ctx_h.reshape(rows, d_k).astype(cdt), wo_ref[lo:lo + d_k, :],
            preferred_element_type=jnp.float32)

    out = out_acc + bo_ref[...]
    o_ref[...] = out.reshape(Bt, S, D).astype(o_ref.dtype)   # lane-dense store


def _mha_self_kernel(x_ref, wqkv_ref, bqkv_ref, wo_ref, bo_ref, o_ref,
                     *, n_heads, d_k, compute_dtype):
    """Self-attention path: one fused (rows, D) @ (D, 3D) QKV projection."""
    Bt, S, D = x_ref.shape
    rows = Bt * S
    cdt = compute_dtype
    x2 = x_ref[...].reshape(rows, D).astype(cdt)
    qkv = jnp.dot(x2, wqkv_ref[...],
                  preferred_element_type=jnp.float32) + bqkv_ref[...]
    _attention_core(qkv[:, 0:D], qkv[:, D:2 * D], qkv[:, 2 * D:3 * D],
                    wo_ref, bo_ref, o_ref, n_heads=n_heads, d_k=d_k, cdt=cdt)


def _mha_cross_kernel(q_ref, k_ref, v_ref, wqkv_ref, bqkv_ref,
                      wo_ref, bo_ref, o_ref,
                      *, n_heads, d_k, compute_dtype):
    """General path (distinct q/k/v): three fat MXU projections."""
    Bt, S, D = q_ref.shape
    rows = Bt * S
    cdt = compute_dtype
    q2 = q_ref[...].reshape(rows, D).astype(cdt)
    k2 = k_ref[...].reshape(rows, D).astype(cdt)
    v2 = v_ref[...].reshape(rows, D).astype(cdt)
    qp = jnp.dot(q2, wqkv_ref[:, 0:D],
                 preferred_element_type=jnp.float32) + bqkv_ref[:, 0:D]
    kp = jnp.dot(k2, wqkv_ref[:, D:2 * D],
                 preferred_element_type=jnp.float32) + bqkv_ref[:, D:2 * D]
    vp = jnp.dot(v2, wqkv_ref[:, 2 * D:3 * D],
                 preferred_element_type=jnp.float32) + bqkv_ref[:, 2 * D:3 * D]
    _attention_core(qp, kp, vp, wo_ref, bo_ref, o_ref,
                    n_heads=n_heads, d_k=d_k, cdt=cdt)


def _vmem_estimate(block_b, S, D, n_inputs, compute_dtype, weight_buffers):
    """Rough per-step VMEM footprint in bytes."""
    cb = jnp.dtype(compute_dtype).itemsize
    rows = block_b * S
    io = (n_inputs + 1) * 2 * rows * D * 4          # activation blocks, 2 bufs
    weights = weight_buffers * ((3 * D * D + D * D) * cb + 4 * D * 4)
    temps = 4 * rows * D * 4 + 3 * block_b * S * S * 4 + 3 * rows * D * cb
    return io + weights + temps


def _pick_block_b(B, S, D, n_inputs, compute_dtype):
    """Largest batch block that (a) leaves grid >= 2 when B > 1 (so v7x's two
    TensorCores both get work) and (b) fits a conservative 48 MiB VMEM budget
    (v7x has 64 MiB physical, 32 MiB scoped default)."""
    budget = 48 * 2 ** 20
    divisors = [d for d in range(B, 0, -1) if B % d == 0]
    preferred = [d for d in divisors if B // d >= 2] or divisors
    for d in preferred:
        if _vmem_estimate(d, S, D, n_inputs, compute_dtype, 2) <= budget:
            return d
    return preferred[-1]


def mha_forward(q, k, v, params, *, n_heads, block_b=None,
                compute_dtype=jnp.float32):
    """Pallas multi-head attention forward (mask=None path).

    q, k, v: (B, S, D) float32.  If q, k and v are the *same array object*
    (self-attention) the QKV projection is fused into a single matmul and only
    one input block is DMA'd per grid step.  compute_dtype=jnp.bfloat16 feeds
    the bf16-native MXU (recommended on v5e as well as v6e/v7x); accumulation
    and softmax stay in f32.
    """
    B, S, D = q.shape
    assert k.shape == (B, S, D) and v.shape == (B, S, D)
    assert D % n_heads == 0
    d_k = D // n_heads
    fused_qkv = (q is k) and (k is v)
    n_inputs = 1 if fused_qkv else 3

    if block_b is None:
        block_b = _pick_block_b(B, S, D, n_inputs, compute_dtype)
    assert B % block_b == 0
    grid_b = B // block_b

    wq, bq, wk, bk, wv, bv, wo, bo = params
    cdt = jnp.dtype(compute_dtype)
    scale = 1.0 / math.sqrt(d_k)

    # Host weight prep: transpose, fold softmax scale into Wq/bq, concat QKV,
    # cast weights to compute dtype.  Biases stay f32 (added to f32 acc).
    wqT = (jnp.asarray(wq).T * scale).astype(cdt)
    wkT = jnp.asarray(wk).T.astype(cdt)
    wvT = jnp.asarray(wv).T.astype(cdt)
    woT = jnp.asarray(wo).T.astype(cdt)
    wqkv = jnp.concatenate([wqT, wkT, wvT], axis=1)                 # (D, 3D)
    bqkv = jnp.concatenate(
        [jnp.asarray(bq) * scale, jnp.asarray(bk), jnp.asarray(bv)]
    ).reshape(1, 3 * D).astype(jnp.float32)                         # (1, 3D)
    bo2 = jnp.asarray(bo).reshape(1, D).astype(jnp.float32)

    vmem_limit = int(min(
        64 * 2 ** 20,
        max(2 * _vmem_estimate(block_b, S, D, n_inputs, compute_dtype, 2),
            16 * 2 ** 20)))

    if fused_qkv:
        kernel = functools.partial(_mha_self_kernel, n_heads=n_heads, d_k=d_k,
                                   compute_dtype=compute_dtype)
        args = (q, wqkv, bqkv, woT, bo2)
    else:
        kernel = functools.partial(_mha_cross_kernel, n_heads=n_heads, d_k=d_k,
                                   compute_dtype=compute_dtype)
        args = (q, k, v, wqkv, bqkv, woT, bo2)

    def build_and_call(weight_mode):
        io_spec = pl.BlockSpec((block_b, S, D), lambda b: (b, 0, 0))
        # Grid-invariant weights/biases: weight_mode=pl.Buffered(1) drops the
        # pointless second pipeline buffer (pure VMEM reclaim).
        w3_spec = pl.BlockSpec((D, 3 * D), lambda b: (0, 0),
                               pipeline_mode=weight_mode)
        b3_spec = pl.BlockSpec((1, 3 * D), lambda b: (0, 0),
                               pipeline_mode=weight_mode)
        wo_spec = pl.BlockSpec((D, D), lambda b: (0, 0),
                               pipeline_mode=weight_mode)
        bo_spec = pl.BlockSpec((1, D), lambda b: (0, 0),
                               pipeline_mode=weight_mode)
        if fused_qkv:
            in_specs = [io_spec, w3_spec, b3_spec, wo_spec, bo_spec]
        else:
            in_specs = [io_spec, io_spec, io_spec,
                        w3_spec, b3_spec, wo_spec, bo_spec]
        return pl.pallas_call(
            kernel,
            out_shape=jax.ShapeDtypeStruct((B, S, D), q.dtype),
            grid_spec=pltpu.PrefetchScalarGridSpec(
                num_scalar_prefetch=0,
                grid=(grid_b,),
                in_specs=in_specs,
                out_specs=io_spec,
            ),
            compiler_params=pltpu.CompilerParams(
                dimension_semantics=("parallel",),
                vmem_limit_bytes=vmem_limit),
        )(*args)

    try:
        out = build_and_call(pl.Buffered(1))
        jax.block_until_ready(out)
        return out
    except Exception:
        # Fallback for jax versions where single-buffered pipeline_mode on an
        # operand is not supported: default (double-buffered) weights.
        return build_and_call(None)


def _init_linear(key, d_out, d_in):
    # Mimic torch nn.Linear default init: U(-1/sqrt(fan_in), 1/sqrt(fan_in)).
    kw, kb = jax.random.split(key)
    bound = 1.0 / math.sqrt(d_in)
    w = jax.random.uniform(kw, (d_out, d_in), jnp.float32, -bound, bound)
    b = jax.random.uniform(kb, (d_out,), jnp.float32, -bound, bound)
    return w, b


def _reference(q, k, v, params, *, n_heads):
    # Plain-JAX reference mirroring the PyTorch forward (mask=None).
    wq, bq, wk, bk, wv, bv, wo, bo = params
    B, S, D = q.shape
    d_k = D // n_heads
    qp = q @ wq.T + bq
    kp = k @ wk.T + bk
    vp = v @ wv.T + bv
    qh = qp.reshape(B, S, n_heads, d_k).transpose(0, 2, 1, 3)
    kh = kp.reshape(B, S, n_heads, d_k).transpose(0, 2, 1, 3)
    vh = vp.reshape(B, S, n_heads, d_k).transpose(0, 2, 1, 3)
    scores = jnp.einsum('bhqd,bhkd->bhqk', qh, kh) / math.sqrt(d_k)
    attn = jax.nn.softmax(scores, axis=-1)
    ctx = jnp.einsum('bhqk,bhkd->bhqd', attn, vh)
    ctx = ctx.transpose(0, 2, 1, 3).reshape(B, S, D)
    return ctx @ wo.T + bo


if __name__ == "__main__":
    # Small shapes, but lane-friendly: d_model = 128 (multiple of 128 lanes).
    B, S, D, H = 2, 8, 128, 4

    root = jax.random.PRNGKey(0)
    k_in, k_q, k_k, k_v, k_o = jax.random.split(root, 5)
    kq_in, kk_in, kv_in = jax.random.split(k_in, 3)

    q = jax.random.normal(kq_in, (B, S, D), jnp.float32)
    k = jax.random.normal(kk_in, (B, S, D), jnp.float32)
    v = jax.random.normal(kv_in, (B, S, D), jnp.float32)

    wq, bq = _init_linear(k_q, D, D)
    wk, bk = _init_linear(k_k, D, D)
    wv, bv = _init_linear(k_v, D, D)
    wo, bo = _init_linear(k_o, D, D)
    params = (wq, bq, wk, bk, wv, bv, wo, bo)

    # General (cross-attention) path, f32 compute: strict check.
    ref = _reference(q, k, v, params, n_heads=H)
    out = mha_forward(q, k, v, params, n_heads=H)
    out = jax.block_until_ready(out)
    assert out.shape == (B, S, D)
    assert jnp.allclose(out, ref, atol=1e-4, rtol=1e-4), "f32 mismatch vs reference"

    # Self-attention path (q is k is v): fused (D, 3D) QKV projection.
    ref_self = _reference(q, q, q, params, n_heads=H)
    out_self = mha_forward(q, q, q, params, n_heads=H)
    out_self = jax.block_until_ready(out_self)
    assert jnp.allclose(out_self, ref_self, atol=1e-4, rtol=1e-4), \
        "self-attention (fused QKV) mismatch vs reference"

    # bf16 MXU path (recommended on v5e/v6e/v7x): looser tolerance, f32 acc.
    out_bf16 = mha_forward(q, k, v, params, n_heads=H,
                           compute_dtype=jnp.bfloat16)
    out_bf16 = jax.block_until_ready(out_bf16)
    assert jnp.allclose(out_bf16, ref, atol=5e-2, rtol=5e-2), \
        "bf16 mismatch vs reference"

    print("KERNEL_OK")
</pallas_src>

<mosaic_0001>
module attributes {stable_mosaic.version = 11 : i64} {
  func.func @_mha_cross_kernel(%arg0: i32, %arg1: memref<1x8x128xf32, #tpu.memory_space<vmem>>, %arg2: memref<1x8x128xf32, #tpu.memory_space<vmem>>, %arg3: memref<1x8x128xf32, #tpu.memory_space<vmem>>, %arg4: memref<128x384xf32, #tpu.memory_space<vmem>>, %arg5: memref<1x384xf32, #tpu.memory_space<vmem>>, %arg6: memref<128x128xf32, #tpu.memory_space<vmem>>, %arg7: memref<1x128xf32, #tpu.memory_space<vmem>>, %arg8: memref<1x8x128xf32, #tpu.memory_space<vmem>>) attributes {dimension_semantics = [#tpu.dimension_semantics<parallel>], iteration_bounds = array<i64: 2>, scalar_prefetch = 0 : i64, scratch_operands = 0 : i64, tpu.core_type = #tpu.core_type<tc>, window_params = [{transform_indices = @transform_0, window_bounds = array<i64: 1, 8, 128>}, {transform_indices = @transform_1, window_bounds = array<i64: 1, 8, 128>}, {transform_indices = @transform_2, window_bounds = array<i64: 1, 8, 128>}, {pipeline_mode = #tpu.pipeline_mode<synchronous>, transform_indices = @transform_3, window_bounds = array<i64: 128, 384>}, {pipeline_mode = #tpu.pipeline_mode<synchronous>, transform_indices = @transform_4, window_bounds = array<i64: 1, 384>}, {pipeline_mode = #tpu.pipeline_mode<synchronous>, transform_indices = @transform_5, window_bounds = array<i64: 128, 128>}, {pipeline_mode = #tpu.pipeline_mode<synchronous>, transform_indices = @transform_6, window_bounds = array<i64: 1, 128>}, {transform_indices = @transform_7, window_bounds = array<i64: 1, 8, 128>}]} {
    %c0 = arith.constant 0 : index
    %c0_0 = arith.constant 0 : index
    %c0_1 = arith.constant 0 : index
    %0 = vector.load %arg1[%c0, %c0_0, %c0_1] : memref<1x8x128xf32, #tpu.memory_space<vmem>>, vector<1x8x128xf32>
    %1 = vector.shape_cast %0 : vector<1x8x128xf32> to vector<8x128xf32>
    %c0_2 = arith.constant 0 : index
    %c0_3 = arith.constant 0 : index
    %c0_4 = arith.constant 0 : index
    %2 = vector.load %arg2[%c0_2, %c0_3, %c0_4] : memref<1x8x128xf32, #tpu.memory_space<vmem>>, vector<1x8x128xf32>
    %3 = vector.shape_cast %2 : vector<1x8x128xf32> to vector<8x128xf32>
    %c0_5 = arith.constant 0 : index
    %c0_6 = arith.constant 0 : index
    %c0_7 = arith.constant 0 : index
    %4 = vector.load %arg3[%c0_5, %c0_6, %c0_7] : memref<1x8x128xf32, #tpu.memory_space<vmem>>, vector<1x8x128xf32>
    %5 = vector.shape_cast %4 : vector<1x8x128xf32> to vector<8x128xf32>
    %c0_8 = arith.constant 0 : index
    %c0_9 = arith.constant 0 : index
    %6 = vector.load %arg4[%c0_8, %c0_9] : memref<128x384xf32, #tpu.memory_space<vmem>>, vector<128x128xf32>
    %cst = arith.constant dense<0.000000e+00> : vector<8x128xf32>
    %7 = tpu.matmul %1, %6, %cst {dimension_numbers = #tpu.dot_dimension_numbers<[1], [0], [0], [1], [0, 0, 1, 1], [], []>} : vector<8x128xf32>, vector<128x128xf32>, vector<8x128xf32> -> vector<8x128xf32>
    %c0_10 = arith.constant 0 : index
    %c0_11 = arith.constant 0 : index
    %8 = vector.load %arg5[%c0_10, %c0_11] : memref<1x384xf32, #tpu.memory_space<vmem>>, vector<1x128xf32>
    %9 = vector.broadcast %8 : vector<1x128xf32> to vector<8x128xf32>
    %10 = arith.addf %7, %9 : vector<8x128xf32>
    %c0_12 = arith.constant 0 : index
    %c128 = arith.constant 128 : index
    %11 = vector.load %arg4[%c0_12, %c128] : memref<128x384xf32, #tpu.memory_space<vmem>>, vector<128x128xf32>
    %cst_13 = arith.constant dense<0.000000e+00> : vector<8x128xf32>
    %12 = tpu.matmul %3, %11, %cst_13 {dimension_numbers = #tpu.dot_dimension_numbers<[1], [0], [0], [1], [0, 0, 1, 1], [], []>} : vector<8x128xf32>, vector<128x128xf32>, vector<8x128xf32> -> vector<8x128xf32>
    %c0_14 = arith.constant 0 : index
    %c128_15 = arith.constant 128 : index
    %13 = vector.load %arg5[%c0_14, %c128_15] : memref<1x384xf32, #tpu.memory_space<vmem>>, vector<1x128xf32>
    %14 = vector.broadcast %13 : vector<1x128xf32> to vector<8x128xf32>
    %15 = arith.addf %12, %14 : vector<8x128xf32>
    %c0_16 = arith.constant 0 : index
    %c256 = arith.constant 256 : index
    %16 = vector.load %arg4[%c0_16, %c256] : memref<128x384xf32, #tpu.memory_space<vmem>>, vector<128x128xf32>
    %cst_17 = arith.constant dense<0.000000e+00> : vector<8x128xf32>
    %17 = tpu.matmul %5, %16, %cst_17 {dimension_numbers = #tpu.dot_dimension_numbers<[1], [0], [0], [1], [0, 0, 1, 1], [], []>} : vector<8x128xf32>, vector<128x128xf32>, vector<8x128xf32> -> vector<8x128xf32>
    %c0_18 = arith.constant 0 : index
    %c256_19 = arith.constant 256 : index
    %18 = vector.load %arg5[%c0_18, %c256_19] : memref<1x384xf32, #tpu.memory_space<vmem>>, vector<1x128xf32>
    %19 = vector.broadcast %18 : vector<1x128xf32> to vector<8x128xf32>
    %20 = arith.addf %17, %19 : vector<8x128xf32>
    %21 = vector.shape_cast %10 : vector<8x128xf32> to vector<1x8x128xf32>
    %22 = vector.shape_cast %15 : vector<8x128xf32> to vector<1x8x128xf32>
    %23 = vector.shape_cast %20 : vector<8x128xf32> to vector<1x8x128xf32>
    %cst_20 = arith.constant 0.000000e+00 : f32
    %24 = vector.broadcast %cst_20 : f32 to vector<8x128xf32>
    %25 = vector.extract_strided_slice %21 {offsets = [0, 0, 0], sizes = [1, 8, 32], strides = [1, 1, 1]} : vector<1x8x128xf32> to vector<1x8x32xf32>
    %26 = vector.extract_strided_slice %22 {offsets = [0, 0, 0], sizes = [1, 8, 32], strides = [1, 1, 1]} : vector<1x8x128xf32> to vector<1x8x32xf32>
    %27 = vector.extract_strided_slice %23 {offsets = [0, 0, 0], sizes = [1, 8, 32], strides = [1, 1, 1]} : vector<1x8x128xf32> to vector<1x8x32xf32>
    "tpu.trace_start"() <{level = 10 : i32, message = "bqd,bkd->bqk"}> : () -> ()
    %cst_21 = arith.constant dense<0.000000e+00> : vector<1x8x8xf32>
    %28 = tpu.matmul %25, %26, %cst_21 {dimension_numbers = #tpu.dot_dimension_numbers<[2], [2], [1], [1], [0, 0, 0, 1, 1, 1], [0], [0]>} : vector<1x8x32xf32>, vector<1x8x32xf32>, vector<1x8x8xf32> -> vector<1x8x8xf32>
    "tpu.trace_stop"() : () -> ()
    %cst_22 = arith.constant dense<0xFF800000> : vector<1x8xf32>
    %29 = vector.multi_reduction <maximumf>, %28, %cst_22 [2] : vector<1x8x8xf32> to vector<1x8xf32>
    %30 = vector.shape_cast %29 : vector<1x8xf32> to vector<1x8x1xf32>
    %31 = vector.broadcast %30 : vector<1x8x1xf32> to vector<1x8x8xf32>
    %32 = arith.subf %28, %31 : vector<1x8x8xf32>
    %33 = math.exp %32 : vector<1x8x8xf32>
    %cst_23 = arith.constant dense<0.000000e+00> : vector<1x8xf32>
    %34 = vector.multi_reduction <add>, %33, %cst_23 [2] : vector<1x8x8xf32> to vector<1x8xf32>
    %35 = vector.shape_cast %34 : vector<1x8xf32> to vector<1x8x1xf32>
    %36 = tpu.reciprocal %35 {approx = true} : vector<1x8x1xf32> -> vector<1x8x1xf32>
    %37 = arith.mulf %35, %36 : vector<1x8x1xf32>
    %cst_24 = arith.constant 2.000000e+00 : f32
    %38 = vector.broadcast %cst_24 : f32 to vector<1x8x1xf32>
    %39 = arith.subf %38, %37 : vector<1x8x1xf32>
    %40 = arith.mulf %36, %39 : vector<1x8x1xf32>
    %41 = vector.broadcast %40 : vector<1x8x1xf32> to vector<1x8x8xf32>
    %42 = arith.mulf %33, %41 : vector<1x8x8xf32>
    "tpu.trace_start"() <{level = 10 : i32, message = "bqk,bkd->bqd"}> : () -> ()
    %cst_25 = arith.constant dense<0.000000e+00> : vector<1x8x32xf32>
    %43 = tpu.matmul %42, %27, %cst_25 {dimension_numbers = #tpu.dot_dimension_numbers<[2], [1], [1], [2], [0, 0, 0, 1, 1, 2], [0], [0]>} : vector<1x8x8xf32>, vector<1x8x32xf32>, vector<1x8x32xf32> -> vector<1x8x32xf32>
    "tpu.trace_stop"() : () -> ()
    %44 = vector.shape_cast %43 : vector<1x8x32xf32> to vector<8x32xf32>
    %c0_26 = arith.constant 0 : index
    %c0_27 = arith.constant 0 : index
    %45 = vector.load %arg6[%c0_26, %c0_27] : memref<128x128xf32, #tpu.memory_space<vmem>>, vector<32x128xf32>
    %cst_28 = arith.constant dense<0.000000e+00> : vector<8x128xf32>
    %46 = tpu.matmul %44, %45, %cst_28 {dimension_numbers = #tpu.dot_dimension_numbers<[1], [0], [0], [1], [0, 0, 1, 1], [], []>} : vector<8x32xf32>, vector<32x128xf32>, vector<8x128xf32> -> vector<8x128xf32>
    %47 = arith.addf %24, %46 : vector<8x128xf32>
    %48 = vector.extract_strided_slice %21 {offsets = [0, 0, 32], sizes = [1, 8, 32], strides = [1, 1, 1]} : vector<1x8x128xf32> to vector<1x8x32xf32>
    %49 = vector.extract_strided_slice %22 {offsets = [0, 0, 32], sizes = [1, 8, 32], strides = [1, 1, 1]} : vector<1x8x128xf32> to vector<1x8x32xf32>
    %50 = vector.extract_strided_slice %23 {offsets = [0, 0, 32], sizes = [1, 8, 32], strides = [1, 1, 1]} : vector<1x8x128xf32> to vector<1x8x32xf32>
    "tpu.trace_start"() <{level = 10 : i32, message = "bqd,bkd->bqk"}> : () -> ()
    %cst_29 = arith.constant dense<0.000000e+00> : vector<1x8x8xf32>
    %51 = tpu.matmul %48, %49, %cst_29 {dimension_numbers = #tpu.dot_dimension_numbers<[2], [2], [1], [1], [0, 0, 0, 1, 1, 1], [0], [0]>} : vector<1x8x32xf32>, vector<1x8x32xf32>, vector<1x8x8xf32> -> vector<1x8x8xf32>
    "tpu.trace_stop"() : () -> ()
    %cst_30 = arith.constant dense<0xFF800000> : vector<1x8xf32>
    %52 = vector.multi_reduction <maximumf>, %51, %cst_30 [2] : vector<1x8x8xf32> to vector<1x8xf32>
    %53 = vector.shape_cast %52 : vector<1x8xf32> to vector<1x8x1xf32>
    %54 = vector.broadcast %53 : vector<1x8x1xf32> to vector<1x8x8xf32>
    %55 = arith.subf %51, %54 : vector<1x8x8xf32>
    %56 = math.exp %55 : vector<1x8x8xf32>
    %cst_31 = arith.constant dense<0.000000e+00> : vector<1x8xf32>
    %57 = vector.multi_reduction <add>, %56, %cst_31 [2] : vector<1x8x8xf32> to vector<1x8xf32>
    %58 = vector.shape_cast %57 : vector<1x8xf32> to vector<1x8x1xf32>
    %59 = tpu.reciprocal %58 {approx = true} : vector<1x8x1xf32> -> vector<1x8x1xf32>
    %60 = arith.mulf %58, %59 : vector<1x8x1xf32>
    %cst_32 = arith.constant 2.000000e+00 : f32
    %61 = vector.broadcast %cst_32 : f32 to vector<1x8x1xf32>
    %62 = arith.subf %61, %60 : vector<1x8x1xf32>
    %63 = arith.mulf %59, %62 : vector<1x8x1xf32>
    %64 = vector.broadcast %63 : vector<1x8x1xf32> to vector<1x8x8xf32>
    %65 = arith.mulf %56, %64 : vector<1x8x8xf32>
    "tpu.trace_start"() <{level = 10 : i32, message = "bqk,bkd->bqd"}> : () -> ()
    %cst_33 = arith.constant dense<0.000000e+00> : vector<1x8x32xf32>
    %66 = tpu.matmul %65, %50, %cst_33 {dimension_numbers = #tpu.dot_dimension_numbers<[2], [1], [1], [2], [0, 0, 0, 1, 1, 2], [0], [0]>} : vector<1x8x8xf32>, vector<1x8x32xf32>, vector<1x8x32xf32> -> vector<1x8x32xf32>
    "tpu.trace_stop"() : () -> ()
    %67 = vector.shape_cast %66 : vector<1x8x32xf32> to vector<8x32xf32>
    %c32 = arith.constant 32 : index
    %c0_34 = arith.constant 0 : index
    %68 = vector.load %arg6[%c32, %c0_34] : memref<128x128xf32, #tpu.memory_space<vmem>>, vector<32x128xf32>
    %cst_35 = arith.constant dense<0.000000e+00> : vector<8x128xf32>
    %69 = tpu.matmul %67, %68, %cst_35 {dimension_numbers = #tpu.dot_dimension_numbers<[1], [0], [0], [1], [0, 0, 1, 1], [], []>} : vector<8x32xf32>, vector<32x128xf32>, vector<8x128xf32> -> vector<8x128xf32>
    %70 = arith.addf %47, %69 : vector<8x128xf32>
    %71 = vector.extract_strided_slice %21 {offsets = [0, 0, 64], sizes = [1, 8, 32], strides = [1, 1, 1]} : vector<1x8x128xf32> to vector<1x8x32xf32>
    %72 = vector.extract_strided_slice %22 {offsets = [0, 0, 64], sizes = [1, 8, 32], strides = [1, 1, 1]} : vector<1x8x128xf32> to vector<1x8x32xf32>
    %73 = vector.extract_strided_slice %23 {offsets = [0, 0, 64], sizes = [1, 8, 32], strides = [1, 1, 1]} : vector<1x8x128xf32> to vector<1x8x32xf32>
    "tpu.trace_start"() <{level = 10 : i32, message = "bqd,bkd->bqk"}> : () -> ()
    %cst_36 = arith.constant dense<0.000000e+00> : vector<1x8x8xf32>
    %74 = tpu.matmul %71, %72, %cst_36 {dimension_numbers = #tpu.dot_dimension_numbers<[2], [2], [1], [1], [0, 0, 0, 1, 1, 1], [0], [0]>} : vector<1x8x32xf32>, vector<1x8x32xf32>, vector<1x8x8xf32> -> vector<1x8x8xf32>
    "tpu.trace_stop"() : () -> ()
    %cst_37 = arith.constant dense<0xFF800000> : vector<1x8xf32>
    %75 = vector.multi_reduction <maximumf>, %74, %cst_37 [2] : vector<1x8x8xf32> to vector<1x8xf32>
    %76 = vector.shape_cast %75 : vector<1x8xf32> to vector<1x8x1xf32>
    %77 = vector.broadcast %76 : vector<1x8x1xf32> to vector<1x8x8xf32>
    %78 = arith.subf %74, %77 : vector<1x8x8xf32>
    %79 = math.exp %78 : vector<1x8x8xf32>
    %cst_38 = arith.constant dense<0.000000e+00> : vector<1x8xf32>
    %80 = vector.multi_reduction <add>, %79, %cst_38 [2] : vector<1x8x8xf32> to vector<1x8xf32>
    %81 = vector.shape_cast %80 : vector<1x8xf32> to vector<1x8x1xf32>
    %82 = tpu.reciprocal %81 {approx = true} : vector<1x8x1xf32> -> vector<1x8x1xf32>
    %83 = arith.mulf %81, %82 : vector<1x8x1xf32>
    %cst_39 = arith.constant 2.000000e+00 : f32
    %84 = vector.broadcast %cst_39 : f32 to vector<1x8x1xf32>
    %85 = arith.subf %84, %83 : vector<1x8x1xf32>
    %86 = arith.mulf %82, %85 : vector<1x8x1xf32>
    %87 = vector.broadcast %86 : vector<1x8x1xf32> to vector<1x8x8xf32>
    %88 = arith.mulf %79, %87 : vector<1x8x8xf32>
    "tpu.trace_start"() <{level = 10 : i32, message = "bqk,bkd->bqd"}> : () -> ()
    %cst_40 = arith.constant dense<0.000000e+00> : vector<1x8x32xf32>
    %89 = tpu.matmul %88, %73, %cst_40 {dimension_numbers = #tpu.dot_dimension_numbers<[2], [1], [1], [2], [0, 0, 0, 1, 1, 2], [0], [0]>} : vector<1x8x8xf32>, vector<1x8x32xf32>, vector<1x8x32xf32> -> vector<1x8x32xf32>
    "tpu.trace_stop"() : () -> ()
    %90 = vector.shape_cast %89 : vector<1x8x32xf32> to vector<8x32xf32>
    %c64 = arith.constant 64 : index
    %c0_41 = arith.constant 0 : index
    %91 = vector.load %arg6[%c64, %c0_41] : memref<128x128xf32, #tpu.memory_space<vmem>>, vector<32x128xf32>
    %cst_42 = arith.constant dense<0.000000e+00> : vector<8x128xf32>
    %92 = tpu.matmul %90, %91, %cst_42 {dimension_numbers = #tpu.dot_dimension_numbers<[1], [0], [0], [1], [0, 0, 1, 1], [], []>} : vector<8x32xf32>, vector<32x128xf32>, vector<8x128xf32> -> vector<8x128xf32>
    %93 = arith.addf %70, %92 : vector<8x128xf32>
    %94 = vector.extract_strided_slice %21 {offsets = [0, 0, 96], sizes = [1, 8, 32], strides = [1, 1, 1]} : vector<1x8x128xf32> to vector<1x8x32xf32>
    %95 = vector.extract_strided_slice %22 {offsets = [0, 0, 96], sizes = [1, 8, 32], strides = [1, 1, 1]} : vector<1x8x128xf32> to vector<1x8x32xf32>
    %96 = vector.extract_strided_slice %23 {offsets = [0, 0, 96], sizes = [1, 8, 32], strides = [1, 1, 1]} : vector<1x8x128xf32> to vector<1x8x32xf32>
    "tpu.trace_start"() <{level = 10 : i32, message = "bqd,bkd->bqk"}> : () -> ()
    %cst_43 = arith.constant dense<0.000000e+00> : vector<1x8x8xf32>
    %97 = tpu.matmul %94, %95, %cst_43 {dimension_numbers = #tpu.dot_dimension_numbers<[2], [2], [1], [1], [0, 0, 0, 1, 1, 1], [0], [0]>} : vector<1x8x32xf32>, vector<1x8x32xf32>, vector<1x8x8xf32> -> vector<1x8x8xf32>
    "tpu.trace_stop"() : () -> ()
    %cst_44 = arith.constant dense<0xFF800000> : vector<1x8xf32>
    %98 = vector.multi_reduction <maximumf>, %97, %cst_44 [2] : vector<1x8x8xf32> to vector<1x8xf32>
    %99 = vector.shape_cast %98 : vector<1x8xf32> to vector<1x8x1xf32>
    %100 = vector.broadcast %99 : vector<1x8x1xf32> to vector<1x8x8xf32>
    %101 = arith.subf %97, %100 : vector<1x8x8xf32>
    %102 = math.exp %101 : vector<1x8x8xf32>
    %cst_45 = arith.constant dense<0.000000e+00> : vector<1x8xf32>
    %103 = vector.multi_reduction <add>, %102, %cst_45 [2] : vector<1x8x8xf32> to vector<1x8xf32>
    %104 = vector.shape_cast %103 : vector<1x8xf32> to vector<1x8x1xf32>
    %105 = tpu.reciprocal %104 {approx = true} : vector<1x8x1xf32> -> vector<1x8x1xf32>
    %106 = arith.mulf %104, %105 : vector<1x8x1xf32>
    %cst_46 = arith.constant 2.000000e+00 : f32
    %107 = vector.broadcast %cst_46 : f32 to vector<1x8x1xf32>
    %108 = arith.subf %107, %106 : vector<1x8x1xf32>
    %109 = arith.mulf %105, %108 : vector<1x8x1xf32>
    %110 = vector.broadcast %109 : vector<1x8x1xf32> to vector<1x8x8xf32>
    %111 = arith.mulf %102, %110 : vector<1x8x8xf32>
    "tpu.trace_start"() <{level = 10 : i32, message = "bqk,bkd->bqd"}> : () -> ()
    %cst_47 = arith.constant dense<0.000000e+00> : vector<1x8x32xf32>
    %112 = tpu.matmul %111, %96, %cst_47 {dimension_numbers = #tpu.dot_dimension_numbers<[2], [1], [1], [2], [0, 0, 0, 1, 1, 2], [0], [0]>} : vector<1x8x8xf32>, vector<1x8x32xf32>, vector<1x8x32xf32> -> vector<1x8x32xf32>
    "tpu.trace_stop"() : () -> ()
    %113 = vector.shape_cast %112 : vector<1x8x32xf32> to vector<8x32xf32>
    %c96 = arith.constant 96 : index
    %c0_48 = arith.constant 0 : index
    %114 = vector.load %arg6[%c96, %c0_48] : memref<128x128xf32, #tpu.memory_space<vmem>>, vector<32x128xf32>
    %cst_49 = arith.constant dense<0.000000e+00> : vector<8x128xf32>
    %115 = tpu.matmul %113, %114, %cst_49 {dimension_numbers = #tpu.dot_dimension_numbers<[1], [0], [0], [1], [0, 0, 1, 1], [], []>} : vector<8x32xf32>, vector<32x128xf32>, vector<8x128xf32> -> vector<8x128xf32>
    %116 = arith.addf %93, %115 : vector<8x128xf32>
    %c0_50 = arith.constant 0 : index
    %c0_51 = arith.constant 0 : index
    %117 = vector.load %arg7[%c0_50, %c0_51] : memref<1x128xf32, #tpu.memory_space<vmem>>, vector<1x128xf32>
    %118 = vector.broadcast %117 : vector<1x128xf32> to vector<8x128xf32>
    %119 = arith.addf %116, %118 : vector<8x128xf32>
    %120 = vector.shape_cast %119 : vector<8x128xf32> to vector<1x8x128xf32>
    %c0_52 = arith.constant 0 : index
    %c0_53 = arith.constant 0 : index
    %c0_54 = arith.constant 0 : index
    %121 = vector.load %arg8[%c0_52, %c0_53, %c0_54] : memref<1x8x128xf32, #tpu.memory_space<vmem>>, vector<1x8x128xf32>
    tpu.vector_store %arg8[%c0_52, %c0_53, %c0_54], %120 {strides = array<i32>} : memref<1x8x128xf32, #tpu.memory_space<vmem>>, vector<1x8x128xf32>,
    return
  }
  func.func @transform_0(%arg0: i32) -> (i32, i32, i32) {
    %c0_i32 = arith.constant 0 : i32
    %c0_i32_0 = arith.constant 0 : i32
    %c0_i32_1 = arith.constant 0 : i32
    return %arg0, %c0_i32, %c0_i32_0 : i32, i32, i32
  }
  func.func @transform_1(%arg0: i32) -> (i32, i32, i32) {
    %c0_i32 = arith.constant 0 : i32
    %c0_i32_0 = arith.constant 0 : i32
    %c0_i32_1 = arith.constant 0 : i32
    return %arg0, %c0_i32, %c0_i32_0 : i32, i32, i32
  }
  func.func @transform_2(%arg0: i32) -> (i32, i32, i32) {
    %c0_i32 = arith.constant 0 : i32
    %c0_i32_0 = arith.constant 0 : i32
    %c0_i32_1 = arith.constant 0 : i32
    return %arg0, %c0_i32, %c0_i32_0 : i32, i32, i32
  }
  func.func @transform_3(%arg0: i32) -> (i32, i32) {
    %c0_i32 = arith.constant 0 : i32
    %c0_i32_0 = arith.constant 0 : i32
    %c0_i32_1 = arith.constant 0 : i32
    return %c0_i32, %c0_i32_0 : i32, i32
  }
  func.func @transform_4(%arg0: i32) -> (i32, i32) {
    %c0_i32 = arith.constant 0 : i32
    %c0_i32_0 = arith.constant 0 : i32
    %c0_i32_1 = arith.constant 0 : i32
    return %c0_i32, %c0_i32_0 : i32, i32
  }
  func.func @transform_5(%arg0: i32) -> (i32, i32) {
    %c0_i32 = arith.constant 0 : i32
    %c0_i32_0 = arith.constant 0 : i32
    %c0_i32_1 = arith.constant 0 : i32
    return %c0_i32, %c0_i32_0 : i32, i32
  }
  func.func @transform_6(%arg0: i32) -> (i32, i32) {
    %c0_i32 = arith.constant 0 : i32
    %c0_i32_0 = arith.constant 0 : i32
    %c0_i32_1 = arith.constant 0 : i32
    return %c0_i32, %c0_i32_0 : i32, i32
  }
  func.func @transform_7(%arg0: i32) -> (i32, i32, i32) {
    %c0_i32 = arith.constant 0 : i32
    %c0_i32_0 = arith.constant 0 : i32
    %c0_i32_1 = arith.constant 0 : i32
    return %arg0, %c0_i32, %c0_i32_0 : i32, i32, i32
  }
}

module attributes {stable_mosaic.version = 11 : i64} {
  func.func @_mha_cross_kernel(%arg0: i32, %arg1: memref<1x8x128xf32, #tpu.memory_space<vmem>>, %arg2: memref<1x8x128xf32, #tpu.memory_space<vmem>>, %arg3: memref<1x8x128xf32, #tpu.memory_space<vmem>>, %arg4: memref<128x384xf32, #tpu.memory_space<vmem>>, %arg5: memref<1x384xf32, #tpu.memory_space<vmem>>, %arg6: memref<128x128xf32, #tpu.memory_space<vmem>>, %arg7: memref<1x128xf32, #tpu.memory_space<vmem>>, %arg8: memref<1x8x128xf32, #tpu.memory_space<vmem>>) attributes {dimension_semantics = [#tpu.dimension_semantics<parallel>], iteration_bounds = array<i64: 2>, scalar_prefetch = 0 : i64, scratch_operands = 0 : i64, tpu.core_type = #tpu.core_type<tc>, window_params = [{transform_indices = @transform_0, window_bounds = array<i64: 1, 8, 128>}, {transform_indices = @transform_1, window_bounds = array<i64: 1, 8, 128>}, {transform_indices = @transform_2, window_bounds = array<i64: 1, 8, 128>}, {pipeline_mode = #tpu.pipeline_mode<synchronous>, transform_indices = @transform_3, window_bounds = array<i64: 128, 384>}, {pipeline_mode = #tpu.pipeline_mode<synchronous>, transform_indices = @transform_4, window_bounds = array<i64: 1, 384>}, {pipeline_mode = #tpu.pipeline_mode<synchronous>, transform_indices = @transform_5, window_bounds = array<i64: 128, 128>}, {pipeline_mode = #tpu.pipeline_mode<synchronous>, transform_indices = @transform_6, window_bounds = array<i64: 1, 128>}, {transform_indices = @transform_7, window_bounds = array<i64: 1, 8, 128>}]} {
    %c0 = arith.constant 0 : index
    %c0_0 = arith.constant 0 : index
    %c0_1 = arith.constant 0 : index
    %0 = vector.load %arg1[%c0, %c0_0, %c0_1] : memref<1x8x128xf32, #tpu.memory_space<vmem>>, vector<1x8x128xf32>
    %1 = vector.shape_cast %0 : vector<1x8x128xf32> to vector<8x128xf32>
    %c0_2 = arith.constant 0 : index
    %c0_3 = arith.constant 0 : index
    %c0_4 = arith.constant 0 : index
    %2 = vector.load %arg2[%c0_2, %c0_3, %c0_4] : memref<1x8x128xf32, #tpu.memory_space<vmem>>, vector<1x8x128xf32>
    %3 = vector.shape_cast %2 : vector<1x8x128xf32> to vector<8x128xf32>
    %c0_5 = arith.constant 0 : index
    %c0_6 = arith.constant 0 : index
    %c0_7 = arith.constant 0 : index
    %4 = vector.load %arg3[%c0_5, %c0_6, %c0_7] : memref<1x8x128xf32, #tpu.memory_space<vmem>>, vector<1x8x128xf32>
    %5 = vector.shape_cast %4 : vector<1x8x128xf32> to vector<8x128xf32>
    %c0_8 = arith.constant 0 : index
    %c0_9 = arith.constant 0 : index
    %6 = vector.load %arg4[%c0_8, %c0_9] : memref<128x384xf32, #tpu.memory_space<vmem>>, vector<128x128xf32>
    %cst = arith.constant dense<0.000000e+00> : vector<8x128xf32>
    %7 = tpu.matmul %1, %6, %cst {dimension_numbers = #tpu.dot_dimension_numbers<[1], [0], [0], [1], [0, 0, 1, 1], [], []>} : vector<8x128xf32>, vector<128x128xf32>, vector<8x128xf32> -> vector<8x128xf32>
    %c0_10 = arith.constant 0 : index
    %c0_11 = arith.constant 0 : index
    %8 = vector.load %arg5[%c0_10, %c0_11] : memref<1x384xf32, #tpu.memory_space<vmem>>, vector<1x128xf32>
    %9 = vector.broadcast %8 : vector<1x128xf32> to vector<8x128xf32>
    %10 = arith.addf %7, %9 : vector<8x128xf32>
    %c0_12 = arith.constant 0 : index
    %c128 = arith.constant 128 : index
    %11 = vector.load %arg4[%c0_12, %c128] : memref<128x384xf32, #tpu.memory_space<vmem>>, vector<128x128xf32>
    %cst_13 = arith.constant dense<0.000000e+00> : vector<8x128xf32>
    %12 = tpu.matmul %3, %11, %cst_13 {dimension_numbers = #tpu.dot_dimension_numbers<[1], [0], [0], [1], [0, 0, 1, 1], [], []>} : vector<8x128xf32>, vector<128x128xf32>, vector<8x128xf32> -> vector<8x128xf32>
    %c0_14 = arith.constant 0 : index
    %c128_15 = arith.constant 128 : index
    %13 = vector.load %arg5[%c0_14, %c128_15] : memref<1x384xf32, #tpu.memory_space<vmem>>, vector<1x128xf32>
    %14 = vector.broadcast %13 : vector<1x128xf32> to vector<8x128xf32>
    %15 = arith.addf %12, %14 : vector<8x128xf32>
    %c0_16 = arith.constant 0 : index
    %c256 = arith.constant 256 : index
    %16 = vector.load %arg4[%c0_16, %c256] : memref<128x384xf32, #tpu.memory_space<vmem>>, vector<128x128xf32>
    %cst_17 = arith.constant dense<0.000000e+00> : vector<8x128xf32>
    %17 = tpu.matmul %5, %16, %cst_17 {dimension_numbers = #tpu.dot_dimension_numbers<[1], [0], [0], [1], [0, 0, 1, 1], [], []>} : vector<8x128xf32>, vector<128x128xf32>, vector<8x128xf32> -> vector<8x128xf32>
    %c0_18 = arith.constant 0 : index
    %c256_19 = arith.constant 256 : index
    %18 = vector.load %arg5[%c0_18, %c256_19] : memref<1x384xf32, #tpu.memory_space<vmem>>, vector<1x128xf32>
    %19 = vector.broadcast %18 : vector<1x128xf32> to vector<8x128xf32>
    %20 = arith.addf %17, %19 : vector<8x128xf32>
    %21 = vector.shape_cast %10 : vector<8x128xf32> to vector<1x8x128xf32>
    %22 = vector.shape_cast %15 : vector<8x128xf32> to vector<1x8x128xf32>
    %23 = vector.shape_cast %20 : vector<8x128xf32> to vector<1x8x128xf32>
    %cst_20 = arith.constant 0.000000e+00 : f32
    %24 = vector.broadcast %cst_20 : f32 to vector<8x128xf32>
    %25 = vector.extract_strided_slice %21 {offsets = [0, 0, 0], sizes = [1, 8, 32], strides = [1, 1, 1]} : vector<1x8x128xf32> to vector<1x8x32xf32>
    %26 = vector.extract_strided_slice %22 {offsets = [0, 0, 0], sizes = [1, 8, 32], strides = [1, 1, 1]} : vector<1x8x128xf32> to vector<1x8x32xf32>
    %27 = vector.extract_strided_slice %23 {offsets = [0, 0, 0], sizes = [1, 8, 32], strides = [1, 1, 1]} : vector<1x8x128xf32> to vector<1x8x32xf32>
    "tpu.trace_start"() <{level = 10 : i32, message = "bqd,bkd->bqk"}> : () -> ()
    %cst_21 = arith.constant dense<0.000000e+00> : vector<1x8x8xf32>
    %28 = tpu.matmul %25, %26, %cst_21 {dimension_numbers = #tpu.dot_dimension_numbers<[2], [2], [1], [1], [0, 0, 0, 1, 1, 1], [0], [0]>} : vector<1x8x32xf32>, vector<1x8x32xf32>, vector<1x8x8xf32> -> vector<1x8x8xf32>
    "tpu.trace_stop"() : () -> ()
    %cst_22 = arith.constant dense<0xFF800000> : vector<1x8xf32>
    %29 = vector.multi_reduction <maximumf>, %28, %cst_22 [2] : vector<1x8x8xf32> to vector<1x8xf32>
    %30 = vector.shape_cast %29 : vector<1x8xf32> to vector<1x8x1xf32>
    %31 = vector.broadcast %30 : vector<1x8x1xf32> to vector<1x8x8xf32>
    %32 = arith.subf %28, %31 : vector<1x8x8xf32>
    %33 = math.exp %32 : vector<1x8x8xf32>
    %cst_23 = arith.constant dense<0.000000e+00> : vector<1x8xf32>
    %34 = vector.multi_reduction <add>, %33, %cst_23 [2] : vector<1x8x8xf32> to vector<1x8xf32>
    %35 = vector.shape_cast %34 : vector<1x8xf32> to vector<1x8x1xf32>
    %36 = tpu.reciprocal %35 {approx = true} : vector<1x8x1xf32> -> vector<1x8x1xf32>
    %37 = arith.mulf %35, %36 : vector<1x8x1xf32>
    %cst_24 = arith.constant 2.000000e+00 : f32
    %38 = vector.broadcast %cst_24 : f32 to vector<1x8x1xf32>
    %39 = arith.subf %38, %37 : vector<1x8x1xf32>
    %40 = arith.mulf %36, %39 : vector<1x8x1xf32>
    %41 = vector.broadcast %40 : vector<1x8x1xf32> to vector<1x8x8xf32>
    %42 = arith.mulf %33, %41 : vector<1x8x8xf32>
    "tpu.trace_start"() <{level = 10 : i32, message = "bqk,bkd->bqd"}> : () -> ()
    %cst_25 = arith.constant dense<0.000000e+00> : vector<1x8x32xf32>
    %43 = tpu.matmul %42, %27, %cst_25 {dimension_numbers = #tpu.dot_dimension_numbers<[2], [1], [1], [2], [0, 0, 0, 1, 1, 2], [0], [0]>} : vector<1x8x8xf32>, vector<1x8x32xf32>, vector<1x8x32xf32> -> vector<1x8x32xf32>
    "tpu.trace_stop"() : () -> ()
    %44 = vector.shape_cast %43 : vector<1x8x32xf32> to vector<8x32xf32>
    %c0_26 = arith.constant 0 : index
    %c0_27 = arith.constant 0 : index
    %45 = vector.load %arg6[%c0_26, %c0_27] : memref<128x128xf32, #tpu.memory_space<vmem>>, vector<32x128xf32>
    %cst_28 = arith.constant dense<0.000000e+00> : vector<8x128xf32>
    %46 = tpu.matmul %44, %45, %cst_28 {dimension_numbers = #tpu.dot_dimension_numbers<[1], [0], [0], [1], [0, 0, 1, 1], [], []>} : vector<8x32xf32>, vector<32x128xf32>, vector<8x128xf32> -> vector<8x128xf32>
    %47 = arith.addf %24, %46 : vector<8x128xf32>
    %48 = vector.extract_strided_slice %21 {offsets = [0, 0, 32], sizes = [1, 8, 32], strides = [1, 1, 1]} : vector<1x8x128xf32> to vector<1x8x32xf32>
    %49 = vector.extract_strided_slice %22 {offsets = [0, 0, 32], sizes = [1, 8, 32], strides = [1, 1, 1]} : vector<1x8x128xf32> to vector<1x8x32xf32>
    %50 = vector.extract_strided_slice %23 {offsets = [0, 0, 32], sizes = [1, 8, 32], strides = [1, 1, 1]} : vector<1x8x128xf32> to vector<1x8x32xf32>
    "tpu.trace_start"() <{level = 10 : i32, message = "bqd,bkd->bqk"}> : () -> ()
    %cst_29 = arith.constant dense<0.000000e+00> : vector<1x8x8xf32>
    %51 = tpu.matmul %48, %49, %cst_29 {dimension_numbers = #tpu.dot_dimension_numbers<[2], [2], [1], [1], [0, 0, 0, 1, 1, 1], [0], [0]>} : vector<1x8x32xf32>, vector<1x8x32xf32>, vector<1x8x8xf32> -> vector<1x8x8xf32>
    "tpu.trace_stop"() : () -> ()
    %cst_30 = arith.constant dense<0xFF800000> : vector<1x8xf32>
    %52 = vector.multi_reduction <maximumf>, %51, %cst_30 [2] : vector<1x8x8xf32> to vector<1x8xf32>
    %53 = vector.shape_cast %52 : vector<1x8xf32> to vector<1x8x1xf32>
    %54 = vector.broadcast %53 : vector<1x8x1xf32> to vector<1x8x8xf32>
    %55 = arith.subf %51, %54 : vector<1x8x8xf32>
    %56 = math.exp %55 : vector<1x8x8xf32>
    %cst_31 = arith.constant dense<0.000000e+00> : vector<1x8xf32>
    %57 = vector.multi_reduction <add>, %56, %cst_31 [2] : vector<1x8x8xf32> to vector<1x8xf32>
    %58 = vector.shape_cast %57 : vector<1x8xf32> to vector<1x8x1xf32>
    %59 = tpu.reciprocal %58 {approx = true} : vector<1x8x1xf32> -> vector<1x8x1xf32>
    %60 = arith.mulf %58, %59 : vector<1x8x1xf32>
    %cst_32 = arith.constant 2.000000e+00 : f32
    %61 = vector.broadcast %cst_32 : f32 to vector<1x8x1xf32>
    %62 = arith.subf %61, %60 : vector<1x8x1xf32>
    %63 = arith.mulf %59, %62 : vector<1x8x1xf32>
    %64 = vector.broadcast %63 : vector<1x8x1xf32> to vector<1x8x8xf32>
    %65 = arith.mulf %56, %64 : vector<1x8x8xf32>
    "tpu.trace_start"() <{level = 10 : i32, message = "bqk,bkd->bqd"}> : () -> ()
    %cst_33 = arith.constant dense<0.000000e+00> : vector<1x8x32xf32>
    %66 = tpu.matmul %65, %50, %cst_33 {dimension_numbers = #tpu.dot_dimension_numbers<[2], [1], [1], [2], [0, 0, 0, 1, 1, 2], [0], [0]>} : vector<1x8x8xf32>, vector<1x8x32xf32>, vector<1x8x32xf32> -> vector<1x8x32xf32>
    "tpu.trace_stop"() : () -> ()
    %67 = vector.shape_cast %66 : vector<1x8x32xf32> to vector<8x32xf32>
    %c32 = arith.constant 32 : index
    %c0_34 = arith.constant 0 : index
    %68 = vector.load %arg6[%c32, %c0_34] : memref<128x128xf32, #tpu.memory_space<vmem>>, vector<32x128xf32>
    %cst_35 = arith.constant dense<0.000000e+00> : vector<8x128xf32>
    %69 = tpu.matmul %67, %68, %cst_35 {dimension_numbers = #tpu.dot_dimension_numbers<[1], [0], [0], [1], [0, 0, 1, 1], [], []>} : vector<8x32xf32>, vector<32x128xf32>, vector<8x128xf32> -> vector<8x128xf32>
    %70 = arith.addf %47, %69 : vector<8x128xf32>
    %71 = vector.extract_strided_slice %21 {offsets = [0, 0, 64], sizes = [1, 8, 32], strides = [1, 1, 1]} : vector<1x8x128xf32> to vector<1x8x32xf32>
    %72 = vector.extract_strided_slice %22 {offsets = [0, 0, 64], sizes = [1, 8, 32], strides = [1, 1, 1]} : vector<1x8x128xf32> to vector<1x8x32xf32>
    %73 = vector.extract_strided_slice %23 {offsets = [0, 0, 64], sizes = [1, 8, 32], strides = [1, 1, 1]} : vector<1x8x128xf32> to vector<1x8x32xf32>
    "tpu.trace_start"() <{level = 10 : i32, message = "bqd,bkd->bqk"}> : () -> ()
    %cst_36 = arith.constant dense<0.000000e+00> : vector<1x8x8xf32>
    %74 = tpu.matmul %71, %72, %cst_36 {dimension_numbers = #tpu.dot_dimension_numbers<[2], [2], [1], [1], [0, 0, 0, 1, 1, 1], [0], [0]>} : vector<1x8x32xf32>, vector<1x8x32xf32>, vector<1x8x8xf32> -> vector<1x8x8xf32>
    "tpu.trace_stop"() : () -> ()
    %cst_37 = arith.constant dense<0xFF800000> : vector<1x8xf32>
    %75 = vector.multi_reduction <maximumf>, %74, %cst_37 [2] : vector<1x8x8xf32> to vector<1x8xf32>
    %76 = vector.shape_cast %75 : vector<1x8xf32> to vector<1x8x1xf32>
    %77 = vector.broadcast %76 : vector<1x8x1xf32> to vector<1x8x8xf32>
    %78 = arith.subf %74, %77 : vector<1x8x8xf32>
    %79 = math.exp %78 : vector<1x8x8xf32>
    %cst_38 = arith.constant dense<0.000000e+00> : vector<1x8xf32>
    %80 = vector.multi_reduction <add>, %79, %cst_38 [2] : vector<1x8x8xf32> to vector<1x8xf32>
    %81 = vector.shape_cast %80 : vector<1x8xf32> to vector<1x8x1xf32>
    %82 = tpu.reciprocal %81 {approx = true} : vector<1x8x1xf32> -> vector<1x8x1xf32>
    %83 = arith.mulf %81, %82 : vector<1x8x1xf32>
    %cst_39 = arith.constant 2.000000e+00 : f32
    %84 = vector.broadcast %cst_39 : f32 to vector<1x8x1xf32>
    %85 = arith.subf %84, %83 : vector<1x8x1xf32>
    %86 = arith.mulf %82, %85 : vector<1x8x1xf32>
    %87 = vector.broadcast %86 : vector<1x8x1xf32> to vector<1x8x8xf32>
    %88 = arith.mulf %79, %87 : vector<1x8x8xf32>
    "tpu.trace_start"() <{level = 10 : i32, message = "bqk,bkd->bqd"}> : () -> ()
    %cst_40 = arith.constant dense<0.000000e+00> : vector<1x8x32xf32>
    %89 = tpu.matmul %88, %73, %cst_40 {dimension_numbers = #tpu.dot_dimension_numbers<[2], [1], [1], [2], [0, 0, 0, 1, 1, 2], [0], [0]>} : vector<1x8x8xf32>, vector<1x8x32xf32>, vector<1x8x32xf32> -> vector<1x8x32xf32>
    "tpu.trace_stop"() : () -> ()
    %90 = vector.shape_cast %89 : vector<1x8x32xf32> to vector<8x32xf32>
    %c64 = arith.constant 64 : index
    %c0_41 = arith.constant 0 : index
    %91 = vector.load %arg6[%c64, %c0_41] : memref<128x128xf32, #tpu.memory_space<vmem>>, vector<32x128xf32>
    %cst_42 = arith.constant dense<0.000000e+00> : vector<8x128xf32>
    %92 = tpu.matmul %90, %91, %cst_42 {dimension_numbers = #tpu.dot_dimension_numbers<[1], [0], [0], [1], [0, 0, 1, 1], [], []>} : vector<8x32xf32>, vector<32x128xf32>, vector<8x128xf32> -> vector<8x128xf32>
    %93 = arith.addf %70, %92 : vector<8x128xf32>
    %94 = vector.extract_strided_slice %21 {offsets = [0, 0, 96], sizes = [1, 8, 32], strides = [1, 1, 1]} : vector<1x8x128xf32> to vector<1x8x32xf32>
    %95 = vector.extract_strided_slice %22 {offsets = [0, 0, 96], sizes = [1, 8, 32], strides = [1, 1, 1]} : vector<1x8x128xf32> to vector<1x8x32xf32>
    %96 = vector.extract_strided_slice %23 {offsets = [0, 0, 96], sizes = [1, 8, 32], strides = [1, 1, 1]} : vector<1x8x128xf32> to vector<1x8x32xf32>
    "tpu.trace_start"() <{level = 10 : i32, message = "bqd,bkd->bqk"}> : () -> ()
    %cst_43 = arith.constant dense<0.000000e+00> : vector<1x8x8xf32>
    %97 = tpu.matmul %94, %95, %cst_43 {dimension_numbers = #tpu.dot_dimension_numbers<[2], [2], [1], [1], [0, 0, 0, 1, 1, 1], [0], [0]>} : vector<1x8x32xf32>, vector<1x8x32xf32>, vector<1x8x8xf32> -> vector<1x8x8xf32>
    "tpu.trace_stop"() : () -> ()
    %cst_44 = arith.constant dense<0xFF800000> : vector<1x8xf32>
    %98 = vector.multi_reduction <maximumf>, %97, %cst_44 [2] : vector<1x8x8xf32> to vector<1x8xf32>
    %99 = vector.shape_cast %98 : vector<1x8xf32> to vector<1x8x1xf32>
    %100 = vector.broadcast %99 : vector<1x8x1xf32> to vector<1x8x8xf32>
    %101 = arith.subf %97, %100 : vector<1x8x8xf32>
    %102 = math.exp %101 : vector<1x8x8xf32>
    %cst_45 = arith.constant dense<0.000000e+00> : vector<1x8xf32>
    %103 = vector.multi_reduction <add>, %102, %cst_45 [2] : vector<1x8x8xf32> to vector<1x8xf32>
    %104 = vector.shape_cast %103 : vector<1x8xf32> to vector<1x8x1xf32>
    %105 = tpu.reciprocal %104 {approx = true} : vector<1x8x1xf32> -> vector<1x8x1xf32>
    %106 = arith.mulf %104, %105 : vector<1x8x1xf32>
    %cst_46 = arith.constant 2.000000e+00 : f32
    %107 = vector.broadcast %cst_46 : f32 to vector<1x8x1xf32>
    %108 = arith.subf %107, %106 : vector<1x8x1xf32>
    %109 = arith.mulf %105, %108 : vector<1x8x1xf32>
    %110 = vector.broadcast %109 : vector<1x8x1xf32> to vector<1x8x8xf32>
    %111 = arith.mulf %102, %110 : vector<1x8x8xf32>
    "tpu.trace_start"() <{level = 10 : i32, message = "bqk,bkd->bqd"}> : () -> ()
    %cst_47 = arith.constant dense<0.000000e+00> : vector<1x8x32xf32>
    %112 = tpu.matmul %111, %96, %cst_47 {dimension_numbers = #tpu.dot_dimension_numbers<[2], [1], [1], [2], [0, 0, 0, 1, 1, 2], [0], [0]>} : vector<1x8x8xf32>, vector<1x8x32xf32>, vector<1x8x32xf32> -> vector<1x8x32xf32>
    "tpu.trace_stop"() : () -> ()
    %113 = vector.shape_cast %112 : vector<1x8x32xf32> to vector<8x32xf32>
    %c96 = arith.constant 96 : index
    %c0_48 = arith.constant 0 : index
    %114 = vector.load %arg6[%c96, %c0_48] : memref<128x128xf32, #tpu.memory_space<vmem>>, vector<32x128xf32>
    %cst_49 = arith.constant dense<0.000000e+00> : vector<8x128xf32>
    %115 = tpu.matmul %113, %114, %cst_49 {dimension_numbers = #tpu.dot_dimension_numbers<[1], [0], [0], [1], [0, 0, 1, 1], [], []>} : vector<8x32xf32>, vector<32x128xf32>, vector<8x128xf32> -> vector<8x128xf32>
    %116 = arith.addf %93, %115 : vector<8x128xf32>
    %c0_50 = arith.constant 0 : index
    %c0_51 = arith.constant 0 : index
    %117 = vector.load %arg7[%c0_50, %c0_51] : memref<1x128xf32, #tpu.memory_space<vmem>>, vector<1x128xf32>
    %118 = vector.broadcast %117 : vector<1x128xf32> to vector<8x128xf32>
    %119 = arith.addf %116, %118 : vector<8x128xf32>
    %120 = vector.shape_cast %119 : vector<8x128xf32> to vector<1x8x128xf32>
    %c0_52 = arith.constant 0 : index
    %c0_53 = arith.constant 0 : index
    %c0_54 = arith.constant 0 : index
    %121 = vector.load %arg8[%c0_52, %c0_53, %c0_54] : memref<1x8x128xf32, #tpu.memory_space<vmem>>, vector<1x8x128xf32>
    tpu.vector_store %arg8[%c0_52, %c0_53, %c0_54], %120 {strides = array<i32>} : memref<1x8x128xf32, #tpu.memory_space<vmem>>, vector<1x8x128xf32>,
    return
  }
  func.func @transform_0(%arg0: i32) -> (i32, i32, i32) {
    %c0_i32 = arith.constant 0 : i32
    %c0_i32_0 = arith.constant 0 : i32
    %c0_i32_1 = arith.constant 0 : i32
    return %arg0, %c0_i32, %c0_i32_0 : i32, i32, i32
  }
  func.func @transform_1(%arg0: i32) -> (i32, i32, i32) {
    %c0_i32 = arith.constant 0 : i32
    %c0_i32_0 = arith.constant 0 : i32
    %c0_i32_1 = arith.constant 0 : i32
    return %arg0, %c0_i32, %c0_i32_0 : i32, i32, i32
  }
  func.func @transform_2(%arg0: i32) -> (i32, i32, i32) {
    %c0_i32 = arith.constant 0 : i32
    %c0_i32_0 = arith.constant 0 : i32
    %c0_i32_1 = arith.constant 0 : i32
    return %arg0, %c0_i32, %c0_i32_0 : i32, i32, i32
  }
  func.func @transform_3(%arg0: i32) -> (i32, i32) {
    %c0_i32 = arith.constant 0 : i32
    %c0_i32_0 = arith.constant 0 : i32
    %c0_i32_1 = arith.constant 0 : i32
    return %c0_i32, %c0_i32_0 : i32, i32
  }
  func.func @transform_4(%arg0: i32) -> (i32, i32) {
    %c0_i32 = arith.constant 0 : i32
    %c0_i32_0 = arith.constant 0 : i32
    %c0_i32_1 = arith.constant 0 : i32
    return %c0_i32, %c0_i32_0 : i32, i32
  }
  func.func @transform_5(%arg0: i32) -> (i32, i32) {
    %c0_i32 = arith.constant 0 : i32
    %c0_i32_0 = arith.constant 0 : i32
    %c0_i32_1 = arith.constant 0 : i32
    return %c0_i32, %c0_i32_0 : i32, i32
  }
  func.func @transform_6(%arg0: i32) -> (i32, i32) {
    %c0_i32 = arith.constant 0 : i32
    %c0_i32_0 = arith.constant 0 : i32
    %c0_i32_1 = arith.constant 0 : i32
    return %c0_i32, %c0_i32_0 : i32, i32
  }
  func.func @transform_7(%arg0: i32) -> (i32, i32, i32) {
    %c0_i32 = arith.constant 0 : i32
    %c0_i32_0 = arith.constant 0 : i32
    %c0_i32_1 = arith.constant 0 : i32
    return %arg0, %c0_i32, %c0_i32_0 : i32, i32, i32
  }
}

</mosaic_0001>

<bundles_post_ra>
// kernel: tpu_custom_call.1
= control target key start
LH: loop header
LB: loop body
LE: loop exit
PB: predicated region body
PF: predicated region fallthrough
CT: control target
= control target key end

     0   :  { %s1743_s0 = inlined_call_operand.hbm [shape: f32[2,8,128], index: 0, kind: input, shape index: {}]   ;;  %s1744_s1 = inlined_call_operand.hbm [shape: f32[2,8,128], index: 1, kind: input, shape index: {}]   ;;  %s1745_s2 = inlined_call_operand.hbm [shape: f32[2,8,128], index: 2, kind: input, shape index: {}]   ;;  %s1746_s3 = inlined_call_operand.hbm [shape: f32[128,384], index: 3, kind: input, shape index: {}]   ;;  %s1747_s4 = inlined_call_operand.vmem [shape: f32[1,384], index: 4, kind: input, shape index: {}]   ;;  %s1748_s5 = inlined_call_operand.hbm [shape: f32[128,128], index: 5, kind: input, shape index: {}]   ;;  %s1749_s6 = inlined_call_operand.vmem [shape: f32[1,128], index: 6, kind: input, shape index: {}]   ;;  %s1750_s7 = inlined_call_operand.hbm [shape: f32[2,8,128], index: 7, kind: output, shape index: {}]  }
   0x1   :  { %1758 = sst [smem:[#allocation21_spill]] %s1744_s1 }
   0x2   :  { %1759 = sst [smem:[#allocation22_spill]] %s1746_s3 }
   0x3   :  { %12 = vsyncpa [#allocation3], 0 }
   0x4   :  { %14 = vsyncpa [#allocation3 + $0x1], 0 }
   0x5   :  { %15 = vsyncpa [#allocation6], 0 }
   0x6   :  { %17 = vsyncpa [#allocation6 + $0x1], 0 }
   0x7   :  { %18 = vsyncpa [#allocation9], 0 }
   0x8   :  { %19 = vsyncpa [#allocation4], 0 }
   0x9   :  { %21 = vsyncpa [#allocation4 + $0x1], 0  ;;  %s1478_s24 = smov 0   ;;  %s1480_s25 = smov 0  }
   0xa   :  { %s1482_s26 = smov 0   ;;  %s1484_s27 = smov 0  }
   0xb LB: > { %1760 = sst [smem:[#allocation16_spill]] %s1415_s24  ;;  %s1502_s8 = sadd.s32 4294967295, %s1427_s27   ;;  %s1427_s27 = sphi %s1484_s27, %s1780_s27   ;;  %s1423_s26 = sphi %s1482_s26, %s1784_s26   ;;  %s1419_s25 = sphi %s1480_s25, %s1783_s25   ;;  %s1415_s24 = sphi %s1478_s24, %s1782_s24  }
   0xc   : > { %1761 = sst [smem:[#allocation17_spill]] %s1427_s27  ;;  %p1062_p0 = scmp.ge.s32.totalorder %s1427_s27, 1 }
   0xd   : > { %s1762_s3 = sld [smem:[#allocation22_spill]]  ;;  %p1757_p1 = scmp.eq.s32.totalorder %s1502_s8, 0 }
   0xe   : > { %p220_p2 = scmp.lt.s32.totalorder %s1427_s27, 3  ;;  %s1429_s10 = smov [#allocation8]  }
   0xf   : > { %s233_s11 = sshll.u32 %s1429_s10, 4  ;;  %s1430_s13 = smov 384   ;;  %s234_s11 = int_to_ptr.vmem [resolvable:$true] %s233_s11 }
  0x10   : > { %p1507_p3 = pnand %p1062_p0, %p220_p2  ;;  %s1431_s14 = smov 24  }
  0x11   : > { %s1061_s15 = sadd.s32 4294967294, %s1427_s27   ;;  %s1524_s16 = sadd.s32 1, %s1427_s27  }
  0x12   : > { %p1115_p4 = pneg %p1507_p3  ;;  %1765 = sst [smem:[#allocation18_spill]] %s1524_s16 }
  0x13   : > { %s231_s30 = sshll.u32 %s1762_s3, 4  ;;  %s34_s17 = sadd.s32 1, %s1423_s26  ;;  %s232_s30 = int_to_ptr.hbm [resolvable:$true] %s231_s30 }
  0x14   : > { %p1516_p6 = pnand %p1115_p4, %p1757_p1  ;;  %s31_s18 = ssub.s32 %s1427_s27, %s1524_s16 }
  0x15   : > { %p41_p7 = scmp.ne.s32.totalorder %s1423_s26, %s1419_s25  ;;  %p32_p8 = scmp.eq.s32.totalorder %s31_s18, 0 }
  0x16   : > { %1118 = dma.hbm_to_vmem [thread:$0]  (!%p1516_p6), %s232_s30, 6144, %s234_s11, [#allocation9], %s1430_s13, %s1430_s13, %s1431_s14  }
  0x17   : > { %p42_p9 = scmp.eq.s32.totalorder %s1427_s27, 0  ;;  %p47_p10 = scmp.ne.s32.totalorder %s1419_s25, %s1415_s24 }
  0x18   : > { %p207_p11 = scmp.eq.s32.totalorder %s1502_s8, 1  ;;  %p213_p2 = scmp.eq.s32.totalorder %s1061_s15, 1 }
  0x19   : > { %s1536_s19 = scalar_select %p32_p8, %s1423_s26, %s34_s17  }
  0x1a   : > { %p43_p12 = por %p42_p9, %p41_p7  ;;  %p1540_p13 = por %p1757_p1, %p47_p10 }
  0x1b   : > { %1766 = sst [smem:[#allocation19_spill]] %s1536_s19  ;;  %p1544_p0 = por %p207_p11, %p41_p7 }
  0x1c   : > { %p1138_p4 = scmp.lt.s32.totalorder %s1427_s27, 2  ;;  %s1751_s22 = sand.u32 1, %s1423_s26  }
  0x1d   : > { %p1550_p5 = por %p213_p2, %p47_p10  ;;  %s1556_s28 = sshll.u32 %s1751_s22, 3 }
  0x1e   : > { %s1559_s29 = sshll.u32 %s1427_s27, 3  ;;  %p1561_p8 = pnand %p1138_p4, %p43_p12 }
  0x1f   : > { %s1769_s23 = scalar_select %p1550_p5, 1, 0 }
  0x20   : > { %s286_s10 = sand.u32 1, %s1427_s27   ;;  %s1772_s1 = sld [smem:[#allocation21_spill]] }
  0x21   : > { %1770 = sst [smem:[#allocation20_spill]] %s1769_s23  ;;  %s290_s15 = scalar_lea.vmem [#allocation5], %s1556_s28 }
  0x22   : > { %s298_s17 = sshll.u32 %s290_s15, 4  ;;  %s248_s19 = sshll.u32 %s1748_s5, 4  ;;  %s299_s17 = int_to_ptr.vmem [resolvable:$true] %s298_s17  ;;  %s249_s19 = int_to_ptr.hbm [resolvable:$true] %s248_s19 }
  0x23   : > { %s1574_s16 = scalar_lea.sflag [#allocation6], %s286_s10  ;;  %p1237_p9 = pneg %p1561_p8 }
  0x26   : > { %s294_s14 = scalar_lea.hbm %s1772_s1, %s1559_s29 }
  0x27   : > { %s296_s18 = sshll.u32 %s294_s14, 4  ;;  %s1240_s14 = scalar_lea.hbm %s1772_s1, 16  ;;  %s297_s18 = int_to_ptr.hbm [resolvable:$true] %s296_s18 }
  0x28   : > { %s1233_s23 = sshra.s32 %s297_s18, 4  ;;  %s1234_s23 = int_to_ptr.hbm [resolvable:$true] %s1233_s23 }
  0x29   : > { %s1235_s24 = scalar_lea.hbm %s1234_s23, 8  ;;  %p1241_p12 = scmp.lt.s32.totalorder %s1234_s23, %s1772_s1 }
  0x2a   : > { %p1236_p7 = scmp.ne.s32.totalorder %s1234_s23, %s1235_s24  ;;  %p1242_p2 = scmp.lt.s32.totalorder %s1240_s14, %s1235_s24 }
  0x2c   : > { %p1238_p10 = pnand %p1237_p9, %p1236_p7  ;;  %p1243_p4 = por %p1242_p2, %p1241_p12 }
  0x2e   : > { %p1239_p11 = pneg %p1238_p10 }
  0x30   : > { %p1244_p1 = pnand %p1243_p4, %p1239_p11 }
  0x32   : > { %1247 = shalt.err (!%p1244_p1)
}
  0x33   : > { %1128 = dma.hbm_to_vmem [thread:$0]  (!%p1561_p8), %s297_s18, 128, %s299_s17, %s1574_s16  }
  0x34   : > { %s1432_s3 = smov [#allocation10]   ;;  %s1433_s10 = smov 128  }
  0x35   : > { %s250_s22 = sshll.u32 %s1432_s3, 4  ;;  %s1434_s27 = smov 8   ;;  %s251_s22 = int_to_ptr.vmem [resolvable:$true] %s250_s22 }
  0x36   : > { %1121 = dma.hbm_to_vmem [thread:$0]  (!%p1516_p6), %s249_s19, 2048, %s251_s22, [#allocation9], %s1433_s10, %s1433_s10, %s1434_s27  }
  0x37   : > { %s275_s11 = scalar_lea.hbm %s1743_s0, %s1559_s29  ;;  %s271_s13 = scalar_lea.vmem [#allocation2], %s1556_s28 }
  0x38   : > { %s279_s14 = sshll.u32 %s271_s13, 4  ;;  %s277_s15 = sshll.u32 %s275_s11, 4  ;;  %s280_s14 = int_to_ptr.vmem [resolvable:$true] %s279_s14  ;;  %s278_s15 = int_to_ptr.hbm [resolvable:$true] %s277_s15 }
  0x39   : > { %s1773_s1 = sand.u32 1, %s1423_s26   ;;  %s1293_s18 = sshra.s32 %s278_s15, 4  ;;  %s1294_s18 = int_to_ptr.hbm [resolvable:$true] %s1293_s18 }
  0x3a   : > { %s268_s17 = scalar_lea.sflag [#allocation3], %s1773_s1  ;;  %s1295_s3 = scalar_lea.hbm %s1294_s18, 8 }
  0x3b   : > { %p1296_p1 = scmp.ne.s32.totalorder %s1294_s18, %s1295_s3  ;;  %s1300_s22 = scalar_lea.hbm %s1743_s0, 16 }
  0x3c   : > { %p1301_p6 = scmp.lt.s32.totalorder %s1294_s18, %s1743_s0  ;;  %p1302_p11 = scmp.lt.s32.totalorder %s1300_s22, %s1295_s3 }
  0x3d   : > { %p1298_p7 = pnand %p1296_p1, %p1237_p9 }
  0x3e   : > { %p1303_p12 = por %p1302_p11, %p1301_p6 }
  0x3f   : > { %p1299_p10 = pneg %p1298_p7 }
  0x41   : > { %p1304_p2 = pnand %p1303_p12, %p1299_p10 }
  0x43   : > { %1307 = shalt.err (!%p1304_p2)
}
  0x44   : > { %1125 = dma.hbm_to_vmem [thread:$0]  (!%p1561_p8), %s278_s15, 128, %s280_s14, %s268_s17  }
  0x45   : > { %s313_s23 = scalar_lea.hbm %s1745_s2, %s1559_s29  ;;  %s309_s11 = scalar_lea.vmem [#allocation7], %s1556_s28 }
  0x46   : > { %s317_s13 = sshll.u32 %s309_s11, 4  ;;  %s315_s12 = sshll.u32 %s313_s23, 4  ;;  %s318_s13 = int_to_ptr.vmem [resolvable:$true] %s317_s13  ;;  %s316_s12 = int_to_ptr.hbm [resolvable:$true] %s315_s12 }
  0x47   : > { %s1323_s18 = sshra.s32 %s316_s12, 4  ;;  %s1330_s14 = scalar_lea.hbm %s1745_s2, 16  ;;  %s1324_s18 = int_to_ptr.hbm [resolvable:$true] %s1323_s18 }
  0x48   : > { %s1325_s3 = scalar_lea.hbm %s1324_s18, 8  ;;  %p1331_p10 = scmp.lt.s32.totalorder %s1324_s18, %s1745_s2 }
  0x49   : > { %p1326_p4 = scmp.ne.s32.totalorder %s1324_s18, %s1325_s3  ;;  %p1332_p6 = scmp.lt.s32.totalorder %s1330_s14, %s1325_s3 }
  0x4b   : > { %p1328_p1 = pnand %p1326_p4, %p1237_p9  ;;  %p1333_p11 = por %p1332_p6, %p1331_p10 }
  0x4d   : > { %p1329_p7 = pneg %p1328_p1 }
  0x4f   : > { %p1334_p12 = pnand %p1333_p11, %p1329_p7 }
  0x51   : > { %1337 = shalt.err (!%p1334_p12)
}
  0x52   : > { %1131 = dma.hbm_to_vmem [thread:$0]  (!%p1561_p8), %s316_s12, 128, %s318_s13, %s1574_s16  }
  0x53   : > { %326 = sbr.rel (%p1507_p3) target bundleno = 1442 (0x5a2), region = 48  ;;  %s1630_s28 = sand.u32 (!%p1507_p3), 1, %s1419_s25  }
  0x54   : > { %s1633_s29 = sshll.u32 (!%p1507_p3), %s1630_s28, 3  ;;  %s329_s10 = scalar_lea.sflag (!%p1507_p3), [#allocation3], %s1630_s28 }
  0x55   : > { %s332_s27 = scalar_lea.vmem (!%p1507_p3), [#allocation2], %s1633_s29 }
  0x58   : > { %1398 = dma.done.wait (%p1540_p13), %s329_s10, 128  }
  0x59   : > { %1400 = vsyncadd (%p1540_p13), %s329_s10, 4294967168  ;;  %s338_s9 = sand.u32 1, %s1502_s8   ;;  %s342_s30 = scalar_lea.vmem [#allocation5], %s1633_s29 }
  0x5a   : > { %s339_s16 = scalar_lea.sflag [#allocation6], %s338_s9 }
  0x5b   : > { %1402 = dma.done.wait (%p1540_p13), %s339_s16, 256  }
  0x5c   : > { %1404 = vsyncadd (%p1540_p13), %s339_s16, 4294967040  ;;  %s352_s1 = scalar_lea.vmem [#allocation7], %s1633_s29  ;;  %p1774_p3 = scmp.eq.s32.totalorder %s1502_s8, 0 }
  0x5e   : > { %1406 = dma.done.wait (%p1774_p3), [#allocation9], 8192   ;;  %p1775_p8 = pmov %p1774_p3 }
  0x5f   : > { %v462_v0 = vld [vmem:[#allocation8 + $0x170] sm:$0xff]  ;;  %v461_v1 = vld [vmem:[#allocation8 + $0x158] sm:$0xff]  ;;  %v422_v2 = vld [vmem:[#allocation8 + $0x168] sm:$0xff]  ;;  %vm527_vm0 = vcmask 261120   ;;  %s1435_s13 = smov 64   ;;  %s1436_s12 = smov 96  }
  0x60   : > { %1408 = vsyncadd (%p1775_p8), [#allocation9], 4294959104  ;;  %467 = vmatpush.msra.mxu1 %v462_v0  ;;  %427 = vmatpush.msra.mxu0 %v422_v2  ;;  %v421_v3 = vld [vmem:[#allocation8 + $0x150] sm:$0xff]  ;;  %v460_v4 = vld [vmem:[#allocation8 + $0x140] sm:$0xff]  ;;  %s1437_s18 = smov 32   ;;  %vm554_vm1 = vcmask 64512  }
  0x61   : > { %v420_v5 = vld [vmem:[#allocation8 + $0x138] sm:$0xff]  ;;  %v459_v6 = vld [vmem:[#allocation8 + $0x128] sm:$0xff]  ;;  %v419_v7 = vld [vmem:[#allocation8 + $0x120] sm:$0xff]  ;;  %s1096_s22 = sshll.u32 %s1502_s8, 3  ;;  %s403_s9 = scalar_lea.vmem [#allocation11], %s1633_s29 }
  0x62   : > { %468 = vmatpush.msra.mxu1 %v461_v1  ;;  %428 = vmatpush.msra.mxu0 %v421_v3  ;;  %v458_v8 = vld [vmem:[#allocation8 + $0x110] sm:$0xff]  ;;  %v418_v9 = vld [vmem:[#allocation8 + $0x108] sm:$0xff]  ;;  %v457_v10 = vld [vmem:[#allocation8 + $0xf8] sm:$0xff]  ;;  %s924_s17 = scalar_lea.hbm %s1750_s7, %s1096_s22  ;;  %s926_s16 = sshll.u32 %s403_s9, 4  ;;  %s927_s16 = int_to_ptr.vmem [resolvable:$true] %s926_s16 }
  0x63   : > { %v417_v11 = vld [vmem:[#allocation8 + $0xf0] sm:$0xff]  ;;  %v456_v12 = vld [vmem:[#allocation8 + $0xe0] sm:$0xff]  ;;  %v416_v13 = vld [vmem:[#allocation8 + $0xd8] sm:$0xff]  ;;  %s914_s8 = scalar_lea.sflag [#allocation4], %s1630_s28  ;;  %s1373_s11 = scalar_lea.hbm %s1750_s7, 16 }
  0x64   : > { %469 = vmatpush.msra.mxu1 %v460_v4  ;;  %429 = vmatpush.msra.mxu0 %v420_v5  ;;  %v502_v14 = vld [vmem:[#allocation8 + $0x178] sm:$0xff]  ;;  %v501_v15 = vld [vmem:[#allocation8 + $0x160] sm:$0xff]  ;;  %v455_v16 = vld [vmem:[#allocation8 + $0xc8] sm:$0xff] }
  0x65   : > { %v415_v17 = vld [vmem:[#allocation8 + $0xc0] sm:$0xff]  ;;  %507 = vmatpush.msra.mxu2 %v502_v14  ;;  %v500_v18 = vld [vmem:[#allocation8 + $0x148] sm:$0xff]  ;;  %v454_v19 = vld [vmem:[#allocation8 + $0xb0] sm:$0xff] }
  0x66   : > { %470 = vmatpush.msra.mxu1 %v459_v6  ;;  %430 = vmatpush.msra.mxu0 %v419_v7  ;;  %v414_v20 = vld [vmem:[#allocation8 + $0xa8] sm:$0xff]  ;;  %v499_v21 = vld [vmem:[#allocation8 + $0x130] sm:$0xff]  ;;  %v453_v22 = vld [vmem:[#allocation8 + $0x98] sm:$0xff] }
  0x67   : > { %508 = vmatpush.msra.mxu2 %v501_v15  ;;  %v452_v23 = vld [vmem:[#allocation8 + $0x80] sm:$0xff]  ;;  %v413_v24 = vld [vmem:[#allocation8 + $0x90] sm:$0xff]  ;;  %v498_v25 = vld [vmem:[#allocation8 + $0x118] sm:$0xff] }
  0x68   : > { %471 = vmatpush.msra.mxu1 %v458_v8  ;;  %431 = vmatpush.msra.mxu0 %v418_v9  ;;  %v412_v26 = vld [vmem:[#allocation8 + $0x78] sm:$0xff]  ;;  %v497_v27 = vld [vmem:[#allocation8 + $0x100] sm:$0xff]  ;;  %v451_v28 = vld [vmem:[#allocation8 + $0x68] sm:$0xff] }
  0x69   : > { %509 = vmatpush.msra.mxu2 %v500_v18  ;;  %v411_v29 = vld [vmem:[#allocation8 + $0x60] sm:$0xff]  ;;  %v496_v30 = vld [vmem:[#allocation8 + $0xe8] sm:$0xff]  ;;  %v450_v31 = vld [vmem:[#allocation8 + $0x50] sm:$0xff] }
  0x6a   : > { %472 = vmatpush.msra.mxu1 %v457_v10  ;;  %432 = vmatpush.msra.mxu0 %v417_v11  ;;  %v410_v32 = vld [vmem:[#allocation8 + $0x48] sm:$0xff]  ;;  %v495_v33 = vld [vmem:[#allocation8 + $0xd0] sm:$0xff]  ;;  %v449_v34 = vld [vmem:[#allocation8 + $0x38] sm:$0xff] }
  0x6b   : > { %510 = vmatpush.msra.mxu2 %v499_v21  ;;  %v409_v35 = vld [vmem:[#allocation8 + $0x30] sm:$0xff]  ;;  %v494_v36 = vld [vmem:[#allocation8 + $0xb8] sm:$0xff]  ;;  %v448_v37 = vld [vmem:[#allocation8 + $0x20] sm:$0xff] }
  0x6c   : > { %473 = vmatpush.msra.mxu1 %v456_v12  ;;  %433 = vmatpush.msra.mxu0 %v416_v13  ;;  %v408_v38 = vld [vmem:[#allocation8 + $0x18] sm:$0xff]  ;;  %v493_v39 = vld [vmem:[#allocation8 + $0xa0] sm:$0xff]  ;;  %v447_v40 = vld [vmem:[#allocation8 + $0x8] sm:$0xff] }
  0x6d   : > { %511 = vmatpush.msra.mxu2 %v498_v25  ;;  %v407_v41 = vld [vmem:[#allocation8] sm:$0xff]  ;;  %v404_v43 = vld [vmem:[%s332_s27] sm:$0xff]  ;;  %v492_v44 = vld [vmem:[#allocation8 + $0x88] sm:$0xff] }
  0x6e   : > { %474 = vmatpush.msra.mxu1 %v455_v16  ;;  %434 = vmatpush.msra.mxu0 %v415_v17  ;;  %v405_v42 = vld [vmem:[%s342_s30] sm:$0xff]  ;;  %v491_v45 = vld [vmem:[#allocation8 + $0x70] sm:$0xff]  ;;  %v490_v46 = vld [vmem:[#allocation8 + $0x58] sm:$0xff]  ;;  %s928_s30 = sshll.u32 %s924_s17, 4  ;;  %s929_s30 = int_to_ptr.hbm [resolvable:$true] %s928_s30 }
  0x6f   : > { %512 = vmatpush.msra.mxu2 %v497_v27  ;;  %v489_v47 = vld [vmem:[#allocation8 + $0x40] sm:$0xff]  ;;  %v488_v48 = vld [vmem:[#allocation8 + $0x28] sm:$0xff]  ;;  %v487_v49 = vld [vmem:[#allocation8 + $0x10] sm:$0xff] }
  0x70   : > { %475 = vmatpush.msra.mxu1 %v454_v19  ;;  %435 = vmatpush.msra.mxu0 %v414_v20  ;;  %v406_v50 = vld [vmem:[%s352_s1] sm:$0xff]  ;;  %v593_v10 = vld [vmem:[#allocation10 + $0x8] sm:$0xff]  ;;  %v592_v11 = vld [vmem:[#allocation10] sm:$0xff]  ;;  %s1367_s1 = sshra.s32 %s929_s30, 4  ;;  %s1368_s1 = int_to_ptr.hbm [resolvable:$true] %s1367_s1 }
  0x71   : > { %513 = vmatpush.msra.mxu2 %v496_v30  ;;  %v1183_v51 = vld [vmem:[%s1747_s4 + $0x1] ss:$0 sm:$0xff]  ;;  %v1184_v52 = vld [vmem:[%s1747_s4] ss:$0 sm:$0xff]  ;;  %v1185_v57 = vld [vmem:[%s1747_s4 + $0x2] ss:$0 sm:$0xff]  ;;  %p1374_p4 = scmp.lt.s32.totalorder %s1368_s1, %s1750_s7 }
  0x72   : > { %476 = vmatpush.msra.mxu1 %v453_v22  ;;  %436 = vmatpush.msra.mxu0 %v413_v24  ;;  %v595_v8 = vld [vmem:[#allocation10 + $0x18] sm:$0xff]  ;;  %v594_v9 = vld [vmem:[#allocation10 + $0x10] sm:$0xff]  ;;  %s1369_s20 = scalar_lea.hbm %s1368_s1, 8 }
  0x73   : > { %514 = vmatpush.msra.mxu2 %v495_v33  ;;  %p1370_p13 = scmp.ne.s32.totalorder %s1368_s1, %s1369_s20  ;;  %p1375_p1 = scmp.lt.s32.totalorder %s1373_s11, %s1369_s20 }
  0x74   : > { %477 = vmatpush.msra.mxu1 %v452_v23  ;;  %437 = vmatpush.msra.mxu0 %v412_v26 }
  0x75   : > { %515 = vmatpush.msra.mxu2 %v494_v36  ;;  %p1371_p9 = pnand %p1370_p13, %p1544_p0  ;;  %p1376_p7 = por %p1375_p1, %p1374_p4 }
  0x76   : > { %478 = vmatpush.msra.mxu1 %v451_v28  ;;  %438 = vmatpush.msra.mxu0 %v411_v29 }
  0x77   : > { %516 = vmatpush.msra.mxu2 %v493_v39  ;;  %p1372_p2 = pneg %p1371_p9 }
  0x78   : > { %479 = vmatpush.msra.mxu1 %v450_v31  ;;  %439 = vmatpush.msra.mxu0 %v410_v32 }
  0x79   : > { %517 = vmatpush.msra.mxu2 %v492_v44  ;;  %p1377_p10 = pnand %p1376_p7, %p1372_p2 }
  0x7a   : > { %480 = vmatpush.msra.mxu1 %v449_v34  ;;  %440 = vmatpush.msra.mxu0 %v409_v35 }
  0x7b   : > { %518 = vmatpush.msra.mxu2 %v491_v45 }
  0x7c   : > { %481 = vmatpush.msra.mxu1 %v448_v37  ;;  %441 = vmatpush.msra.mxu0 %v408_v38 }
  0x7d   : > { %519 = vmatpush.msra.mxu2 %v490_v46 }
  0x7e   : > { %482 = vmatpush.msra.mxu1 %v447_v40  ;;  %442 = vmatpush.msra.mxu0 %v407_v41 }
  0x7f   : > { %483 = vmatmul.f32.vlgmr.msra.gmra.mxu1 %v405_v42  ;;  %443 = vmatmul.f32.vlgmr.msra.gmra.mxu0 %v404_v43 }
  0x80   : > { %520 = vmatpush.msra.mxu2 %v489_v47  ;;  %707 = vmatpush.msrb.mxu0 %v595_v8 }
  0x82   : > { %521 = vmatpush.msra.mxu2 %v488_v48  ;;  %708 = vmatpush.msrb.mxu0 %v594_v9 }
  0x84   : > { %522 = vmatpush.msra.mxu2 %v487_v49  ;;  %709 = vmatpush.msrb.mxu0 %v593_v10 }
  0x85   : > { %523 = vmatmul.f32.vlgmr.msra.gmra.mxu2 %v406_v50 }
  0x86   : > { %710 = vmatpush.msrb.mxu0 %v592_v11 }
  0xfc   : > { %v484_v53 = vpop.f32.mrf.mxu1  ;;  %v444_v54 = vpop.f32.mrf.mxu0 }
  0xfd   : > { %v485_v55 = vadd.f32 %v1183_v51, %v484_v53  ;;  %v445_v56 = vadd.f32 %v1184_v52, %v444_v54 }
  0xff   : > { %717 = vrot.lane.b32.xlu2 %v485_v55, %s1435_s13  ;;  %598 = vrot.lane.b32.xlu1 %v485_v55, %s1436_s12 }
 0x100   : > { %1079 = vmatpush.xpose.msk.msra.mxu3 %vm527_vm0, %v485_v55 }
 0x103   : > { %1080 = vmatmul.msk.f32.vlgmr.msra.gmra.mxu3 %vm527_vm0, %v445_v56 }
 0x107   : > { %715 = vrot.lane.b32.xlu2 %v445_v56, %s1435_s13  ;;  %596 = vrot.lane.b32.xlu1 %v445_v56, %s1436_s12 }
 0x108   : > { %v524_v58 = vpop.f32.mrf.mxu2 }
 0x109   : > { %v1672_v59 = vadd.f32 %v1185_v57, %v524_v58  ;;  %v667_v57 = vld [vmem:[#allocation10 + $0x30] sm:$0xff]  ;;  %v666_v58 = vld [vmem:[#allocation10 + $0x28] sm:$0xff] }
 0x10b   : > { %587 = vmatpush.msrb.mxu3 %v1672_v59 }
 0x10f   : > { %811 = vrot.lane.b32.xlu1 %v445_v56, %s1437_s18  ;;  %v668_v56 = vld [vmem:[#allocation10 + $0x38] sm:$0xff] }
 0x159   : > { %v718_v60 = vpop.permute.xlu2 %717 }
 0x15a   : > { %1087 = vmatpush.xpose.msk.msrb.mxu1 %vm527_vm0, %v718_v60  ;;  %v665_v60 = vld [vmem:[#allocation10 + $0x20] sm:$0xff] }
 0x161   : > { %v716_v61 = vpop.permute.xlu2 %715 }
 0x162   : > { %1088 = vmatmul.msk.f32.vlgmr.msrb.gmra.mxu1 %vm527_vm0, %v716_v61  ;;  %v786_v61 = vld [vmem:[#allocation10 + $0x58] sm:$0xff] }
 0x171   : > { %v599_v62 = vpop.permute.xlu1 %598 }
 0x172   : > { %1082 = vmatpush.xpose.msk.msra.mxu3 %vm527_vm0, %v599_v62  ;;  %v785_v62 = vld [vmem:[#allocation10 + $0x50] sm:$0xff] }
 0x179   : > { %v597_v12 = vpop.permute.xlu1 %596 }
 0x181   : > { %v812_v13 = vpop.permute.xlu1 %811 }
 0x186   : > { %v551_v63 = vpop.f32.mrf.mxu3 }
 0x187   : > { %v555_v0 = vsel %vm554_vm1, %v551_v63, -inf }
 0x188   : > { %556 = vmax.xlane.f32.xlu0 %v555_v0  ;;  %v783_v0 = vld [vmem:[#allocation10 + $0x40] sm:$0xff] }
 0x1df   : > { %v740_v1 = vpop.f32.mrf.mxu1 }
 0x1e0   : > { %v743_v2 = vsel %vm554_vm1, %v740_v1, -inf }
 0x1e1   : > { %744 = vmax.xlane.f32.xlu1 %v743_v2  ;;  %v881_v2 = vld [vmem:[#allocation10 + $0x70] sm:$0xff] }
 0x1fa   : > { %639 = vrot.lane.b32.xlu1 %v1672_v59, %s1436_s12 }
 0x1fb   : > { %v557_v3 = vpop.xlane.xlu0 %556 }
 0x1fc   : > { %v558_v4 = vsub.f32 %v551_v63, %v557_v3  ;;  %v784_v63 = vld [vmem:[#allocation10 + $0x48] sm:$0xff] }
 0x1fd   : > { %v880_v3 = vld [vmem:[#allocation10 + $0x68] sm:$0xff] }
 0x1fe   : > { %v559_v5 = vmul.f32 1.442695, %v558_v4 }
 0x200   : > { %1187 = vpow2.f32 %v559_v5 }
 0x206   : > { %v1188_v6 = vpop.eup %1187 }
 0x207   : > { %v561_v7 = vsel %vm554_vm1, %v1188_v6, 0.0 }
 0x208   : > { %562 = vadd.xlane.f32.xlu0 %v561_v7 }
 0x21c   : > { %813 = vrot.lane.b32.xlu0 %v485_v55, %s1437_s18 }
 0x254   : > { %v745_v15 = vpop.xlane.xlu1 %744 }
 0x255   : > { %v746_v23 = vsub.f32 %v740_v1, %v745_v15  ;;  %v882_v1 = vld [vmem:[#allocation10 + $0x78] sm:$0xff] }
 0x257   : > { %v747_v25 = vmul.f32 1.442695, %v746_v23 }
 0x26c   : > { %v640_v21 = vpop.permute.xlu1 %639 }
 0x27b   : > { %v563_v14 = vpop.xlane.xlu0 %562 }
 0x27c   : > { %1189 = vrcp.f32 %v563_v14 }
 0x27d   : > { %1191 = vpow2.f32 %v747_v25 }
 0x282   : > { %v1190_v16 = vpop.eup %1189 }
 0x283   : > { %v565_v17 = vmul.f32 %v1190_v16, %v563_v14  ;;  %v1192_v28 = vpop.eup %1191 }
 0x284   : > { %v749_v29 = vsel %vm554_vm1, %v1192_v28, 0.0 }
 0x285   : > { %v566_v18 = vsub.f32 2.0, %v565_v17 }
 0x287   : > { %v567_v19 = vmul.f32 %v1190_v16, %v566_v18  ;;  %v1186_v18 = vld [vmem:[%s1749_s6] ss:$0 sm:$0xff] }
 0x289   : > { %v568_v20 = vmul.f32 %v1188_v6, %v567_v19 }
 0x28b   : > { %1081 = vmatmul.msk.f32.vlgmr.msrb.gmra.mxu3 %vm554_vm1, %v568_v20 }
 0x28c   : > { %660 = vmatpush.msrb.mxu3 %v640_v21 }
 0x28e   : > { %v814_v22 = vpop.permute.xlu0 %813 }
 0x28f   : > { %1091 = vmatpush.xpose.msk.msra.mxu0 %vm527_vm0, %v814_v22 }
 0x293   : > { %1083 = vmatmul.msk.f32.vlgmr.msra.gmra.mxu3 %vm527_vm0, %v597_v12  ;;  %v879_v12 = vld [vmem:[#allocation10 + $0x60] sm:$0xff] }
 0x294   : > { %684 = vmatpush.msra.mxu3 %v668_v56 }
 0x296   : > { %685 = vmatpush.msra.mxu3 %v667_v57 }
 0x298   : > { %686 = vmatpush.msra.mxu3 %v666_v58 }
 0x29a   : > { %687 = vmatpush.msra.mxu3 %v665_v60 }
 0x30e   : > { %v589_v24 = vpop.f32.mrf.mxu3 }
 0x30f   : > { %1086 = vmatmul.msk.f32.vlgmr.msrb.gmra.mxu0 %vm527_vm0, %v589_v24 }
 0x316   : > { %v621_v26 = vpop.f32.mrf.mxu3 }
 0x317   : > { %1092 = vmatmul.msk.f32.vlgmr.msra.gmra.mxu0 %vm527_vm0, %v812_v13  ;;  %v624_v27 = vsel %vm554_vm1, %v621_v26, -inf }
 0x318   : > { %625 = vmax.xlane.f32.xlu2 %v624_v27 }
 0x320   : > { %750 = vadd.xlane.f32.xlu2 %v749_v29 }
 0x38b   : > { %v626_v30 = vpop.xlane.xlu2 %625 }
 0x38c   : > { %v627_v31 = vsub.f32 %v621_v26, %v626_v30  ;;  %v1690_v32 = vpop.f32.mrf.mxu0 }
 0x38e   : > { %v628_v33 = vmul.f32 1.442695, %v627_v31 }
 0x390   : > { %1193 = vpow2.f32 %v628_v33 }
 0x393   : > { %v751_v38 = vpop.xlane.xlu2 %750 }
 0x394   : > { %v836_v34 = vpop.f32.mrf.mxu0  ;;  %1195 = vrcp.f32 %v751_v38 }
 0x395   : > { %v839_v35 = vsel %vm554_vm1, %v836_v34, -inf }
 0x396   : > { %v1194_v36 = vpop.eup %1193  ;;  %840 = vmax.xlane.f32.xlu0 %v839_v35 }
 0x397   : > { %v630_v37 = vsel %vm554_vm1, %v1194_v36, 0.0 }
 0x398   : > { %631 = vadd.xlane.f32.xlu2 %v630_v37 }
 0x39a   : > { %v1196_v43 = vpop.eup %1195 }
 0x39b   : > { %v753_v44 = vmul.f32 %v1196_v43, %v751_v38 }
 0x39d   : > { %v754_v48 = vsub.f32 2.0, %v753_v44 }
 0x39f   : > { %v755_v52 = vmul.f32 %v1196_v43, %v754_v48 }
 0x3a1   : > { %v756_v54 = vmul.f32 %v1192_v28, %v755_v52 }
 0x3aa   : > { %757 = vrot.lane.b32.xlu0 %v1672_v59, %s1435_s13 }
 0x409   : > { %v841_v39 = vpop.xlane.xlu0 %840 }
 0x40a   : > { %v842_v40 = vsub.f32 %v836_v34, %v841_v39 }
 0x40b   : > { %v632_v41 = vpop.xlane.xlu2 %631 }
 0x40c   : > { %v843_v42 = vmul.f32 1.442695, %v842_v40  ;;  %1197 = vrcp.f32 %v632_v41 }
 0x40e   : > { %1199 = vpow2.f32 %v843_v42 }
 0x412   : > { %v1198_v45 = vpop.eup %1197 }
 0x413   : > { %v634_v46 = vmul.f32 %v1198_v45, %v632_v41 }
 0x414   : > { %v1200_v47 = vpop.eup %1199 }
 0x415   : > { %v635_v49 = vsub.f32 2.0, %v634_v46  ;;  %v845_v50 = vsel %vm554_vm1, %v1200_v47, 0.0 }
 0x416   : > { %846 = vadd.xlane.f32.xlu2 %v845_v50 }
 0x417   : > { %v636_v51 = vmul.f32 %v1198_v45, %v635_v49 }
 0x419   : > { %v637_v53 = vmul.f32 %v1194_v36, %v636_v51 }
 0x41b   : > { %1084 = vmatmul.msk.f32.vlgmr.msrb.gmra.mxu3 %vm554_vm1, %v637_v53 }
 0x41c   : > { %v758_v55 = vpop.permute.xlu0 %757  ;;  %802 = vmatpush.msrb.mxu3 %v786_v61 }
 0x41d   : > { %778 = vmatpush.msrb.mxu2 %v758_v55 }
 0x41e   : > { %1089 = vmatmul.msk.f32.vlgmr.msrb.gmra.mxu2 %vm554_vm1, %v756_v54  ;;  %803 = vmatpush.msrb.mxu3 %v785_v62 }
 0x41f   : > { %898 = vmatpush.msra.mxu2 %v882_v1 }
 0x420   : > { %804 = vmatpush.msrb.mxu3 %v784_v63 }
 0x421   : > { %899 = vmatpush.msra.mxu2 %v881_v2 }
 0x422   : > { %805 = vmatpush.msrb.mxu3 %v783_v0 }
 0x423   : > { %900 = vmatpush.msra.mxu2 %v880_v3 }
 0x425   : > { %901 = vmatpush.msra.mxu2 %v879_v12 }
 0x42e   : > { %853 = vrot.lane.b32.xlu2 %v1672_v59, %s1437_s18 }
 0x489   : > { %v847_v59 = vpop.xlane.xlu2 %846 }
 0x48a   : > { %1201 = vrcp.f32 %v847_v59 }
 0x490   : > { %v1202_v4 = vpop.eup %1201 }
 0x491   : > { %v849_v5 = vmul.f32 %v1202_v4, %v847_v59  ;;  %v854_v6 = vpop.permute.xlu2 %853 }
 0x492   : > { %874 = vmatpush.msra.mxu1 %v854_v6 }
 0x493   : > { %v850_v7 = vsub.f32 2.0, %v849_v5 }
 0x495   : > { %v851_v8 = vmul.f32 %v1202_v4, %v850_v7 }
 0x497   : > { %v852_v9 = vmul.f32 %v1200_v47, %v851_v8 }
 0x499   : > { %1093 = vmatmul.msk.f32.vlgmr.msra.gmra.mxu1 %vm554_vm1, %v852_v9 }
 0x49e   : > { %v662_v10 = vpop.f32.mrf.mxu3 }
 0x49f   : > { %1085 = vmatmul.msk.f32.vlgmr.msra.gmra.mxu3 %vm527_vm0, %v662_v10 }
 0x4a1   : > { %v780_v11 = vpop.f32.mrf.mxu2 }
 0x4a7   : > { %1090 = vmatmul.msk.f32.vlgmr.msrb.gmra.mxu3 %vm527_vm0, %v780_v11 }
 0x516   : > { %v876_v13 = vpop.f32.mrf.mxu1 }
 0x517   : > { %1094 = vmatmul.msk.f32.vlgmr.msra.gmra.mxu2 %vm527_vm0, %v876_v13 }
 0x522   : > { %v689_v14 = vpop.f32.mrf.mxu3 }
 0x523   : > { %v713_v16 = vadd.f32 %v1690_v32, %v689_v14 }
 0x52a   : > { %v807_v15 = vpop.f32.mrf.mxu3 }
 0x52b   : > { %v810_v17 = vadd.f32 %v807_v15, %v713_v16 }
 0x59a   : > { %v903_v19 = vpop.f32.mrf.mxu2 }
 0x59b   : > { %v906_v20 = vadd.f32 %v903_v19, %v810_v17 }
 0x59d   : > { %v911_v21 = vadd.f32 %v1186_v18, %v906_v20 }
 0x59f   : > { %912 = vst [vmem:[%s403_s9] sm:$0xff] %v911_v21 }
 0x5a0   : > { %1380 = shalt.err (!%p1377_p10)
}
 0x5a1   : > { %1113 = dma.vmem_to_hbm [thread:$0]  (%p1544_p0), %s927_s16, 128, %s929_s30, %s914_s8  }
 0x5a2 PF: > { %s1776_s28 = sld [smem:[#allocation16_spill]] }
 0x5a3   : > { %s1778_s18 = sld [smem:[#allocation17_spill]] }
 0x5a8   : > { %s940_s3 = sand.u32 1, %s1776_s28  }
 0x5a9   : > { %p1779_p6 = scmp.ge.s32.totalorder %s1778_s18, 2  ;;  %s941_s19 = scalar_lea.sflag [#allocation4], %s940_s3 }
 0x5ab   : > { %p1133_p11 = pnand %p1779_p6, %p1550_p5 }
 0x5ad   : > { %p1134_p12 = pneg %p1133_p11 }
 0x5af   : > { %1410 = dma.done.wait (%p1134_p12), %s941_s19, 128  }
 0x5b0   : > { %1412 = vsyncadd (%p1134_p12), %s941_s19, 4294967168  ;;  %s1780_s27 = sld [smem:[#allocation18_spill]]  ;;  %s1782_s24 = smov %s1419_s25 }
 0x5b1   : > { %s1781_s22 = sld [smem:[#allocation19_spill]]  ;;  %s1783_s25 = smov %s1423_s26 }
 0x5b6   : > { %p24_p3 = scmp.ge.s32.totalorder %s1780_s27, 4  }
 0x5b7   : > { %s1784_s26 = smov %s1781_s22 }
 0x5b8   :  { %26 = sbr.rel (!%p24_p3) target bundleno = 11 (0xb), region = 125 }
 0x5bd   :  { %947 = vsyncpa [#allocation3], 1 }
 0x5be   :  { %949 = vsyncpa [#allocation3 + $0x1], 1 }
 0x5bf   :  { %950 = vsyncpa [#allocation6], 1 }
 0x5c0   :  { %952 = vsyncpa [#allocation6 + $0x1], 1 }
 0x5c1   :  { %953 = vsyncpa [#allocation9], 1 }
 0x5c2   :  { %954 = vsyncpa [#allocation4], 1 }
 0x5c3   :  { %956 = vsyncpa [#allocation4 + $0x1], 1 }

// kernel: tpu_custom_call.1
= control target key start
LH: loop header
LB: loop body
LE: loop exit
PB: predicated region body
PF: predicated region fallthrough
CT: control target
= control target key end

     0   :  { %s1743_s0 = inlined_call_operand.hbm [shape: f32[2,8,128], index: 0, kind: input, shape index: {}]   ;;  %s1744_s1 = inlined_call_operand.hbm [shape: f32[2,8,128], index: 1, kind: input, shape index: {}]   ;;  %s1745_s2 = inlined_call_operand.hbm [shape: f32[2,8,128], index: 2, kind: input, shape index: {}]   ;;  %s1746_s3 = inlined_call_operand.hbm [shape: f32[128,384], index: 3, kind: input, shape index: {}]   ;;  %s1747_s4 = inlined_call_operand.vmem [shape: f32[1,384], index: 4, kind: input, shape index: {}]   ;;  %s1748_s5 = inlined_call_operand.hbm [shape: f32[128,128], index: 5, kind: input, shape index: {}]   ;;  %s1749_s6 = inlined_call_operand.vmem [shape: f32[1,128], index: 6, kind: input, shape index: {}]   ;;  %s1750_s7 = inlined_call_operand.hbm [shape: f32[2,8,128], index: 7, kind: output, shape index: {}]  }
   0x1   :  { %1758 = sst [smem:[#allocation21_spill]] %s1744_s1 }
   0x2   :  { %1759 = sst [smem:[#allocation22_spill]] %s1746_s3 }
   0x3   :  { %12 = vsyncpa [#allocation3], 0 }
   0x4   :  { %14 = vsyncpa [#allocation3 + $0x1], 0 }
   0x5   :  { %15 = vsyncpa [#allocation6], 0 }
   0x6   :  { %17 = vsyncpa [#allocation6 + $0x1], 0 }
   0x7   :  { %18 = vsyncpa [#allocation9], 0 }
   0x8   :  { %19 = vsyncpa [#allocation4], 0 }
   0x9   :  { %21 = vsyncpa [#allocation4 + $0x1], 0  ;;  %s1478_s24 = smov 0   ;;  %s1480_s25 = smov 0  }
   0xa   :  { %s1482_s26 = smov 0   ;;  %s1484_s27 = smov 0  }
   0xb LB: > { %1760 = sst [smem:[#allocation16_spill]] %s1415_s24  ;;  %s1502_s8 = sadd.s32 4294967295, %s1427_s27   ;;  %s1427_s27 = sphi %s1484_s27, %s1780_s27   ;;  %s1423_s26 = sphi %s1482_s26, %s1784_s26   ;;  %s1419_s25 = sphi %s1480_s25, %s1783_s25   ;;  %s1415_s24 = sphi %s1478_s24, %s1782_s24  }
   0xc   : > { %1761 = sst [smem:[#allocation17_spill]] %s1427_s27  ;;  %p1062_p0 = scmp.ge.s32.totalorder %s1427_s27, 1 }
   0xd   : > { %s1762_s3 = sld [smem:[#allocation22_spill]]  ;;  %p1757_p1 = scmp.eq.s32.totalorder %s1502_s8, 0 }
   0xe   : > { %p220_p2 = scmp.lt.s32.totalorder %s1427_s27, 3  ;;  %s1429_s10 = smov [#allocation8]  }
   0xf   : > { %s233_s11 = sshll.u32 %s1429_s10, 4  ;;  %s1430_s13 = smov 384   ;;  %s234_s11 = int_to_ptr.vmem [resolvable:$true] %s233_s11 }
  0x10   : > { %p1507_p3 = pnand %p1062_p0, %p220_p2  ;;  %s1431_s14 = smov 24  }
  0x11   : > { %s1061_s15 = sadd.s32 4294967294, %s1427_s27   ;;  %s1524_s16 = sadd.s32 1, %s1427_s27  }
  0x12   : > { %p1115_p4 = pneg %p1507_p3  ;;  %1765 = sst [smem:[#allocation18_spill]] %s1524_s16 }
  0x13   : > { %s231_s30 = sshll.u32 %s1762_s3, 4  ;;  %s34_s17 = sadd.s32 1, %s1423_s26  ;;  %s232_s30 = int_to_ptr.hbm [resolvable:$true] %s231_s30 }
  0x14   : > { %p1516_p6 = pnand %p1115_p4, %p1757_p1  ;;  %s31_s18 = ssub.s32 %s1427_s27, %s1524_s16 }
  0x15   : > { %p41_p7 = scmp.ne.s32.totalorder %s1423_s26, %s1419_s25  ;;  %p32_p8 = scmp.eq.s32.totalorder %s31_s18, 0 }
  0x16   : > { %1118 = dma.hbm_to_vmem [thread:$0]  (!%p1516_p6), %s232_s30, 6144, %s234_s11, [#allocation9], %s1430_s13, %s1430_s13, %s1431_s14  }
  0x17   : > { %p42_p9 = scmp.eq.s32.totalorder %s1427_s27, 0  ;;  %p47_p10 = scmp.ne.s32.totalorder %s1419_s25, %s1415_s24 }
  0x18   : > { %p207_p11 = scmp.eq.s32.totalorder %s1502_s8, 1  ;;  %p213_p2 = scmp.eq.s32.totalorder %s1061_s15, 1 }
  0x19   : > { %s1536_s19 = scalar_select %p32_p8, %s1423_s26, %s34_s17  }
  0x1a   : > { %p43_p12 = por %p42_p9, %p41_p7  ;;  %p1540_p13 = por %p1757_p1, %p47_p10 }
  0x1b   : > { %1766 = sst [smem:[#allocation19_spill]] %s1536_s19  ;;  %p1544_p0 = por %p207_p11, %p41_p7 }
  0x1c   : > { %p1138_p4 = scmp.lt.s32.totalorder %s1427_s27, 2  ;;  %s1751_s22 = sand.u32 1, %s1423_s26  }
  0x1d   : > { %p1550_p5 = por %p213_p2, %p47_p10  ;;  %s1556_s28 = sshll.u32 %s1751_s22, 3 }
  0x1e   : > { %s1559_s29 = sshll.u32 %s1427_s27, 3  ;;  %p1561_p8 = pnand %p1138_p4, %p43_p12 }
  0x1f   : > { %s1769_s23 = scalar_select %p1550_p5, 1, 0 }
  0x20   : > { %s286_s10 = sand.u32 1, %s1427_s27   ;;  %s1772_s1 = sld [smem:[#allocation21_spill]] }
  0x21   : > { %1770 = sst [smem:[#allocation20_spill]] %s1769_s23  ;;  %s290_s15 = scalar_lea.vmem [#allocation5], %s1556_s28 }
  0x22   : > { %s298_s17 = sshll.u32 %s290_s15, 4  ;;  %s248_s19 = sshll.u32 %s1748_s5, 4  ;;  %s299_s17 = int_to_ptr.vmem [resolvable:$true] %s298_s17  ;;  %s249_s19 = int_to_ptr.hbm [resolvable:$true] %s248_s19 }
  0x23   : > { %s1574_s16 = scalar_lea.sflag [#allocation6], %s286_s10  ;;  %p1237_p9 = pneg %p1561_p8 }
  0x26   : > { %s294_s14 = scalar_lea.hbm %s1772_s1, %s1559_s29 }
  0x27   : > { %s296_s18 = sshll.u32 %s294_s14, 4  ;;  %s1240_s14 = scalar_lea.hbm %s1772_s1, 16  ;;  %s297_s18 = int_to_ptr.hbm [resolvable:$true] %s296_s18 }
  0x28   : > { %s1233_s23 = sshra.s32 %s297_s18, 4  ;;  %s1234_s23 = int_to_ptr.hbm [resolvable:$true] %s1233_s23 }
  0x29   : > { %s1235_s24 = scalar_lea.hbm %s1234_s23, 8  ;;  %p1241_p12 = scmp.lt.s32.totalorder %s1234_s23, %s1772_s1 }
  0x2a   : > { %p1236_p7 = scmp.ne.s32.totalorder %s1234_s23, %s1235_s24  ;;  %p1242_p2 = scmp.lt.s32.totalorder %s1240_s14, %s1235_s24 }
  0x2c   : > { %p1238_p10 = pnand %p1237_p9, %p1236_p7  ;;  %p1243_p4 = por %p1242_p2, %p1241_p12 }
  0x2e   : > { %p1239_p11 = pneg %p1238_p10 }
  0x30   : > { %p1244_p1 = pnand %p1243_p4, %p1239_p11 }
  0x32   : > { %1247 = shalt.err (!%p1244_p1)
}
  0x33   : > { %1128 = dma.hbm_to_vmem [thread:$0]  (!%p1561_p8), %s297_s18, 128, %s299_s17, %s1574_s16  }
  0x34   : > { %s1432_s3 = smov [#allocation10]   ;;  %s1433_s10 = smov 128  }
  0x35   : > { %s250_s22 = sshll.u32 %s1432_s3, 4  ;;  %s1434_s27 = smov 8   ;;  %s251_s22 = int_to_ptr.vmem [resolvable:$true] %s250_s22 }
  0x36   : > { %1121 = dma.hbm_to_vmem [thread:$0]  (!%p1516_p6), %s249_s19, 2048, %s251_s22, [#allocation9], %s1433_s10, %s1433_s10, %s1434_s27  }
  0x37   : > { %s275_s11 = scalar_lea.hbm %s1743_s0, %s1559_s29  ;;  %s271_s13 = scalar_lea.vmem [#allocation2], %s1556_s28 }
  0x38   : > { %s279_s14 = sshll.u32 %s271_s13, 4  ;;  %s277_s15 = sshll.u32 %s275_s11, 4  ;;  %s280_s14 = int_to_ptr.vmem [resolvable:$true] %s279_s14  ;;  %s278_s15 = int_to_ptr.hbm [resolvable:$true] %s277_s15 }
  0x39   : > { %s1773_s1 = sand.u32 1, %s1423_s26   ;;  %s1293_s18 = sshra.s32 %s278_s15, 4  ;;  %s1294_s18 = int_to_ptr.hbm [resolvable:$true] %s1293_s18 }
  0x3a   : > { %s268_s17 = scalar_lea.sflag [#allocation3], %s1773_s1  ;;  %s1295_s3 = scalar_lea.hbm %s1294_s18, 8 }
  0x3b   : > { %p1296_p1 = scmp.ne.s32.totalorder %s1294_s18, %s1295_s3  ;;  %s1300_s22 = scalar_lea.hbm %s1743_s0, 16 }
  0x3c   : > { %p1301_p6 = scmp.lt.s32.totalorder %s1294_s18, %s1743_s0  ;;  %p1302_p11 = scmp.lt.s32.totalorder %s1300_s22, %s1295_s3 }
  0x3d   : > { %p1298_p7 = pnand %p1296_p1, %p1237_p9 }
  0x3e   : > { %p1303_p12 = por %p1302_p11, %p1301_p6 }
  0x3f   : > { %p1299_p10 = pneg %p1298_p7 }
  0x41   : > { %p1304_p2 = pnand %p1303_p12, %p1299_p10 }
  0x43   : > { %1307 = shalt.err (!%p1304_p2)
}
  0x44   : > { %1125 = dma.hbm_to_vmem [thread:$0]  (!%p1561_p8), %s278_s15, 128, %s280_s14, %s268_s17  }
  0x45   : > { %s313_s23 = scalar_lea.hbm %s1745_s2, %s1559_s29  ;;  %s309_s11 = scalar_lea.vmem [#allocation7], %s1556_s28 }
  0x46   : > { %s317_s13 = sshll.u32 %s309_s11, 4  ;;  %s315_s12 = sshll.u32 %s313_s23, 4  ;;  %s318_s13 = int_to_ptr.vmem [resolvable:$true] %s317_s13  ;;  %s316_s12 = int_to_ptr.hbm [resolvable:$true] %s315_s12 }
  0x47   : > { %s1323_s18 = sshra.s32 %s316_s12, 4  ;;  %s1330_s14 = scalar_lea.hbm %s1745_s2, 16  ;;  %s1324_s18 = int_to_ptr.hbm [resolvable:$true] %s1323_s18 }
  0x48   : > { %s1325_s3 = scalar_lea.hbm %s1324_s18, 8  ;;  %p1331_p10 = scmp.lt.s32.totalorder %s1324_s18, %s1745_s2 }
  0x49   : > { %p1326_p4 = scmp.ne.s32.totalorder %s1324_s18, %s1325_s3  ;;  %p1332_p6 = scmp.lt.s32.totalorder %s1330_s14, %s1325_s3 }
  0x4b   : > { %p1328_p1 = pnand %p1326_p4, %p1237_p9  ;;  %p1333_p11 = por %p1332_p6, %p1331_p10 }
  0x4d   : > { %p1329_p7 = pneg %p1328_p1 }
  0x4f   : > { %p1334_p12 = pnand %p1333_p11, %p1329_p7 }
  0x51   : > { %1337 = shalt.err (!%p1334_p12)
}
  0x52   : > { %1131 = dma.hbm_to_vmem [thread:$0]  (!%p1561_p8), %s316_s12, 128, %s318_s13, %s1574_s16  }
  0x53   : > { %326 = sbr.rel (%p1507_p3) target bundleno = 1442 (0x5a2), region = 48  ;;  %s1630_s28 = sand.u32 (!%p1507_p3), 1, %s1419_s25  }
  0x54   : > { %s1633_s29 = sshll.u32 (!%p1507_p3), %s1630_s28, 3  ;;  %s329_s10 = scalar_lea.sflag (!%p1507_p3), [#allocation3], %s1630_s28 }
  0x55   : > { %s332_s27 = scalar_lea.vmem (!%p1507_p3), [#allocation2], %s1633_s29 }
  0x58   : > { %1398 = dma.done.wait (%p1540_p13), %s329_s10, 128  }
  0x59   : > { %1400 = vsyncadd (%p1540_p13), %s329_s10, 4294967168  ;;  %s338_s9 = sand.u32 1, %s1502_s8   ;;  %s342_s30 = scalar_lea.vmem [#allocation5], %s1633_s29 }
  0x5a   : > { %s339_s16 = scalar_lea.sflag [#allocation6], %s338_s9 }
  0x5b   : > { %1402 = dma.done.wait (%p1540_p13), %s339_s16, 256  }
  0x5c   : > { %1404 = vsyncadd (%p1540_p13), %s339_s16, 4294967040  ;;  %s352_s1 = scalar_lea.vmem [#allocation7], %s1633_s29  ;;  %p1774_p3 = scmp.eq.s32.totalorder %s1502_s8, 0 }
  0x5e   : > { %1406 = dma.done.wait (%p1774_p3), [#allocation9], 8192   ;;  %p1775_p8 = pmov %p1774_p3 }
  0x5f   : > { %v462_v0 = vld [vmem:[#allocation8 + $0x170] sm:$0xff]  ;;  %v461_v1 = vld [vmem:[#allocation8 + $0x158] sm:$0xff]  ;;  %v422_v2 = vld [vmem:[#allocation8 + $0x168] sm:$0xff]  ;;  %vm527_vm0 = vcmask 261120   ;;  %s1435_s13 = smov 64   ;;  %s1436_s12 = smov 96  }
  0x60   : > { %1408 = vsyncadd (%p1775_p8), [#allocation9], 4294959104  ;;  %467 = vmatpush.msra.mxu1 %v462_v0  ;;  %427 = vmatpush.msra.mxu0 %v422_v2  ;;  %v421_v3 = vld [vmem:[#allocation8 + $0x150] sm:$0xff]  ;;  %v460_v4 = vld [vmem:[#allocation8 + $0x140] sm:$0xff]  ;;  %s1437_s18 = smov 32   ;;  %vm554_vm1 = vcmask 64512  }
  0x61   : > { %v420_v5 = vld [vmem:[#allocation8 + $0x138] sm:$0xff]  ;;  %v459_v6 = vld [vmem:[#allocation8 + $0x128] sm:$0xff]  ;;  %v419_v7 = vld [vmem:[#allocation8 + $0x120] sm:$0xff]  ;;  %s1096_s22 = sshll.u32 %s1502_s8, 3  ;;  %s403_s9 = scalar_lea.vmem [#allocation11], %s1633_s29 }
  0x62   : > { %468 = vmatpush.msra.mxu1 %v461_v1  ;;  %428 = vmatpush.msra.mxu0 %v421_v3  ;;  %v458_v8 = vld [vmem:[#allocation8 + $0x110] sm:$0xff]  ;;  %v418_v9 = vld [vmem:[#allocation8 + $0x108] sm:$0xff]  ;;  %v457_v10 = vld [vmem:[#allocation8 + $0xf8] sm:$0xff]  ;;  %s924_s17 = scalar_lea.hbm %s1750_s7, %s1096_s22  ;;  %s926_s16 = sshll.u32 %s403_s9, 4  ;;  %s927_s16 = int_to_ptr.vmem [resolvable:$true] %s926_s16 }
  0x63   : > { %v417_v11 = vld [vmem:[#allocation8 + $0xf0] sm:$0xff]  ;;  %v456_v12 = vld [vmem:[#allocation8 + $0xe0] sm:$0xff]  ;;  %v416_v13 = vld [vmem:[#allocation8 + $0xd8] sm:$0xff]  ;;  %s914_s8 = scalar_lea.sflag [#allocation4], %s1630_s28  ;;  %s1373_s11 = scalar_lea.hbm %s1750_s7, 16 }
  0x64   : > { %469 = vmatpush.msra.mxu1 %v460_v4  ;;  %429 = vmatpush.msra.mxu0 %v420_v5  ;;  %v502_v14 = vld [vmem:[#allocation8 + $0x178] sm:$0xff]  ;;  %v501_v15 = vld [vmem:[#allocation8 + $0x160] sm:$0xff]  ;;  %v455_v16 = vld [vmem:[#allocation8 + $0xc8] sm:$0xff] }
  0x65   : > { %v415_v17 = vld [vmem:[#allocation8 + $0xc0] sm:$0xff]  ;;  %507 = vmatpush.msra.mxu2 %v502_v14  ;;  %v500_v18 = vld [vmem:[#allocation8 + $0x148] sm:$0xff]  ;;  %v454_v19 = vld [vmem:[#allocation8 + $0xb0] sm:$0xff] }
  0x66   : > { %470 = vmatpush.msra.mxu1 %v459_v6  ;;  %430 = vmatpush.msra.mxu0 %v419_v7  ;;  %v414_v20 = vld [vmem:[#allocation8 + $0xa8] sm:$0xff]  ;;  %v499_v21 = vld [vmem:[#allocation8 + $0x130] sm:$0xff]  ;;  %v453_v22 = vld [vmem:[#allocation8 + $0x98] sm:$0xff] }
  0x67   : > { %508 = vmatpush.msra.mxu2 %v501_v15  ;;  %v452_v23 = vld [vmem:[#allocation8 + $0x80] sm:$0xff]  ;;  %v413_v24 = vld [vmem:[#allocation8 + $0x90] sm:$0xff]  ;;  %v498_v25 = vld [vmem:[#allocation8 + $0x118] sm:$0xff] }
  0x68   : > { %471 = vmatpush.msra.mxu1 %v458_v8  ;;  %431 = vmatpush.msra.mxu0 %v418_v9  ;;  %v412_v26 = vld [vmem:[#allocation8 + $0x78] sm:$0xff]  ;;  %v497_v27 = vld [vmem:[#allocation8 + $0x100] sm:$0xff]  ;;  %v451_v28 = vld [vmem:[#allocation8 + $0x68] sm:$0xff] }
  0x69   : > { %509 = vmatpush.msra.mxu2 %v500_v18  ;;  %v411_v29 = vld [vmem:[#allocation8 + $0x60] sm:$0xff]  ;;  %v496_v30 = vld [vmem:[#allocation8 + $0xe8] sm:$0xff]  ;;  %v450_v31 = vld [vmem:[#allocation8 + $0x50] sm:$0xff] }
  0x6a   : > { %472 = vmatpush.msra.mxu1 %v457_v10  ;;  %432 = vmatpush.msra.mxu0 %v417_v11  ;;  %v410_v32 = vld [vmem:[#allocation8 + $0x48] sm:$0xff]  ;;  %v495_v33 = vld [vmem:[#allocation8 + $0xd0] sm:$0xff]  ;;  %v449_v34 = vld [vmem:[#allocation8 + $0x38] sm:$0xff] }
  0x6b   : > { %510 = vmatpush.msra.mxu2 %v499_v21  ;;  %v409_v35 = vld [vmem:[#allocation8 + $0x30] sm:$0xff]  ;;  %v494_v36 = vld [vmem:[#allocation8 + $0xb8] sm:$0xff]  ;;  %v448_v37 = vld [vmem:[#allocation8 + $0x20] sm:$0xff] }
  0x6c   : > { %473 = vmatpush.msra.mxu1 %v456_v12  ;;  %433 = vmatpush.msra.mxu0 %v416_v13  ;;  %v408_v38 = vld [vmem:[#allocation8 + $0x18] sm:$0xff]  ;;  %v493_v39 = vld [vmem:[#allocation8 + $0xa0] sm:$0xff]  ;;  %v447_v40 = vld [vmem:[#allocation8 + $0x8] sm:$0xff] }
  0x6d   : > { %511 = vmatpush.msra.mxu2 %v498_v25  ;;  %v407_v41 = vld [vmem:[#allocation8] sm:$0xff]  ;;  %v404_v43 = vld [vmem:[%s332_s27] sm:$0xff]  ;;  %v492_v44 = vld [vmem:[#allocation8 + $0x88] sm:$0xff] }
  0x6e   : > { %474 = vmatpush.msra.mxu1 %v455_v16  ;;  %434 = vmatpush.msra.mxu0 %v415_v17  ;;  %v405_v42 = vld [vmem:[%s342_s30] sm:$0xff]  ;;  %v491_v45 = vld [vmem:[#allocation8 + $0x70] sm:$0xff]  ;;  %v490_v46 = vld [vmem:[#allocation8 + $0x58] sm:$0xff]  ;;  %s928_s30 = sshll.u32 %s924_s17, 4  ;;  %s929_s30 = int_to_ptr.hbm [resolvable:$true] %s928_s30 }
  0x6f   : > { %512 = vmatpush.msra.mxu2 %v497_v27  ;;  %v489_v47 = vld [vmem:[#allocation8 + $0x40] sm:$0xff]  ;;  %v488_v48 = vld [vmem:[#allocation8 + $0x28] sm:$0xff]  ;;  %v487_v49 = vld [vmem:[#allocation8 + $0x10] sm:$0xff] }
  0x70   : > { %475 = vmatpush.msra.mxu1 %v454_v19  ;;  %435 = vmatpush.msra.mxu0 %v414_v20  ;;  %v406_v50 = vld [vmem:[%s352_s1] sm:$0xff]  ;;  %v593_v10 = vld [vmem:[#allocation10 + $0x8] sm:$0xff]  ;;  %v592_v11 = vld [vmem:[#allocation10] sm:$0xff]  ;;  %s1367_s1 = sshra.s32 %s929_s30, 4  ;;  %s1368_s1 = int_to_ptr.hbm [resolvable:$true] %s1367_s1 }
  0x71   : > { %513 = vmatpush.msra.mxu2 %v496_v30  ;;  %v1183_v51 = vld [vmem:[%s1747_s4 + $0x1] ss:$0 sm:$0xff]  ;;  %v1184_v52 = vld [vmem:[%s1747_s4] ss:$0 sm:$0xff]  ;;  %v1185_v57 = vld [vmem:[%s1747_s4 + $0x2] ss:$0 sm:$0xff]  ;;  %p1374_p4 = scmp.lt.s32.totalorder %s1368_s1, %s1750_s7 }
  0x72   : > { %476 = vmatpush.msra.mxu1 %v453_v22  ;;  %436 = vmatpush.msra.mxu0 %v413_v24  ;;  %v595_v8 = vld [vmem:[#allocation10 + $0x18] sm:$0xff]  ;;  %v594_v9 = vld [vmem:[#allocation10 + $0x10] sm:$0xff]  ;;  %s1369_s20 = scalar_lea.hbm %s1368_s1, 8 }
  0x73   : > { %514 = vmatpush.msra.mxu2 %v495_v33  ;;  %p1370_p13 = scmp.ne.s32.totalorder %s1368_s1, %s1369_s20  ;;  %p1375_p1 = scmp.lt.s32.totalorder %s1373_s11, %s1369_s20 }
  0x74   : > { %477 = vmatpush.msra.mxu1 %v452_v23  ;;  %437 = vmatpush.msra.mxu0 %v412_v26 }
  0x75   : > { %515 = vmatpush.msra.mxu2 %v494_v36  ;;  %p1371_p9 = pnand %p1370_p13, %p1544_p0  ;;  %p1376_p7 = por %p1375_p1, %p1374_p4 }
  0x76   : > { %478 = vmatpush.msra.mxu1 %v451_v28  ;;  %438 = vmatpush.msra.mxu0 %v411_v29 }
  0x77   : > { %516 = vmatpush.msra.mxu2 %v493_v39  ;;  %p1372_p2 = pneg %p1371_p9 }
  0x78   : > { %479 = vmatpush.msra.mxu1 %v450_v31  ;;  %439 = vmatpush.msra.mxu0 %v410_v32 }
  0x79   : > { %517 = vmatpush.msra.mxu2 %v492_v44  ;;  %p1377_p10 = pnand %p1376_p7, %p1372_p2 }
  0x7a   : > { %480 = vmatpush.msra.mxu1 %v449_v34  ;;  %440 = vmatpush.msra.mxu0 %v409_v35 }
  0x7b   : > { %518 = vmatpush.msra.mxu2 %v491_v45 }
  0x7c   : > { %481 = vmatpush.msra.mxu1 %v448_v37  ;;  %441 = vmatpush.msra.mxu0 %v408_v38 }
  0x7d   : > { %519 = vmatpush.msra.mxu2 %v490_v46 }
  0x7e   : > { %482 = vmatpush.msra.mxu1 %v447_v40  ;;  %442 = vmatpush.msra.mxu0 %v407_v41 }
  0x7f   : > { %483 = vmatmul.f32.vlgmr.msra.gmra.mxu1 %v405_v42  ;;  %443 = vmatmul.f32.vlgmr.msra.gmra.mxu0 %v404_v43 }
  0x80   : > { %520 = vmatpush.msra.mxu2 %v489_v47  ;;  %707 = vmatpush.msrb.mxu0 %v595_v8 }
  0x82   : > { %521 = vmatpush.msra.mxu2 %v488_v48  ;;  %708 = vmatpush.msrb.mxu0 %v594_v9 }
  0x84   : > { %522 = vmatpush.msra.mxu2 %v487_v49  ;;  %709 = vmatpush.msrb.mxu0 %v593_v10 }
  0x85   : > { %523 = vmatmul.f32.vlgmr.msra.gmra.mxu2 %v406_v50 }
  0x86   : > { %710 = vmatpush.msrb.mxu0 %v592_v11 }
  0xfc   : > { %v484_v53 = vpop.f32.mrf.mxu1  ;;  %v444_v54 = vpop.f32.mrf.mxu0 }
  0xfd   : > { %v485_v55 = vadd.f32 %v1183_v51, %v484_v53  ;;  %v445_v56 = vadd.f32 %v1184_v52, %v444_v54 }
  0xff   : > { %717 = vrot.lane.b32.xlu2 %v485_v55, %s1435_s13  ;;  %598 = vrot.lane.b32.xlu1 %v485_v55, %s1436_s12 }
 0x100   : > { %1079 = vmatpush.xpose.msk.msra.mxu3 %vm527_vm0, %v485_v55 }
 0x103   : > { %1080 = vmatmul.msk.f32.vlgmr.msra.gmra.mxu3 %vm527_vm0, %v445_v56 }
 0x107   : > { %715 = vrot.lane.b32.xlu2 %v445_v56, %s1435_s13  ;;  %596 = vrot.lane.b32.xlu1 %v445_v56, %s1436_s12 }
 0x108   : > { %v524_v58 = vpop.f32.mrf.mxu2 }
 0x109   : > { %v1672_v59 = vadd.f32 %v1185_v57, %v524_v58  ;;  %v667_v57 = vld [vmem:[#allocation10 + $0x30] sm:$0xff]  ;;  %v666_v58 = vld [vmem:[#allocation10 + $0x28] sm:$0xff] }
 0x10b   : > { %587 = vmatpush.msrb.mxu3 %v1672_v59 }
 0x10f   : > { %811 = vrot.lane.b32.xlu1 %v445_v56, %s1437_s18  ;;  %v668_v56 = vld [vmem:[#allocation10 + $0x38] sm:$0xff] }
 0x159   : > { %v718_v60 = vpop.permute.xlu2 %717 }
 0x15a   : > { %1087 = vmatpush.xpose.msk.msrb.mxu1 %vm527_vm0, %v718_v60  ;;  %v665_v60 = vld [vmem:[#allocation10 + $0x20] sm:$0xff] }
 0x161   : > { %v716_v61 = vpop.permute.xlu2 %715 }
 0x162   : > { %1088 = vmatmul.msk.f32.vlgmr.msrb.gmra.mxu1 %vm527_vm0, %v716_v61  ;;  %v786_v61 = vld [vmem:[#allocation10 + $0x58] sm:$0xff] }
 0x171   : > { %v599_v62 = vpop.permute.xlu1 %598 }
 0x172   : > { %1082 = vmatpush.xpose.msk.msra.mxu3 %vm527_vm0, %v599_v62  ;;  %v785_v62 = vld [vmem:[#allocation10 + $0x50] sm:$0xff] }
 0x179   : > { %v597_v12 = vpop.permute.xlu1 %596 }
 0x181   : > { %v812_v13 = vpop.permute.xlu1 %811 }
 0x186   : > { %v551_v63 = vpop.f32.mrf.mxu3 }
 0x187   : > { %v555_v0 = vsel %vm554_vm1, %v551_v63, -inf }
 0x188   : > { %556 = vmax.xlane.f32.xlu0 %v555_v0  ;;  %v783_v0 = vld [vmem:[#allocation10 + $0x40] sm:$0xff] }
 0x1df   : > { %v740_v1 = vpop.f32.mrf.mxu1 }
 0x1e0   : > { %v743_v2 = vsel %vm554_vm1, %v740_v1, -inf }
 0x1e1   : > { %744 = vmax.xlane.f32.xlu1 %v743_v2  ;;  %v881_v2 = vld [vmem:[#allocation10 + $0x70] sm:$0xff] }
 0x1fa   : > { %639 = vrot.lane.b32.xlu1 %v1672_v59, %s1436_s12 }
 0x1fb   : > { %v557_v3 = vpop.xlane.xlu0 %556 }
 0x1fc   : > { %v558_v4 = vsub.f32 %v551_v63, %v557_v3  ;;  %v784_v63 = vld [vmem:[#allocation10 + $0x48] sm:$0xff] }
 0x1fd   : > { %v880_v3 = vld [vmem:[#allocation10 + $0x68] sm:$0xff] }
 0x1fe   : > { %v559_v5 = vmul.f32 1.442695, %v558_v4 }
 0x200   : > { %1187 = vpow2.f32 %v559_v5 }
 0x206   : > { %v1188_v6 = vpop.eup %1187 }
 0x207   : > { %v561_v7 = vsel %vm554_vm1, %v1188_v6, 0.0 }
 0x208   : > { %562 = vadd.xlane.f32.xlu0 %v561_v7 }
 0x21c   : > { %813 = vrot.lane.b32.xlu0 %v485_v55, %s1437_s18 }
 0x254   : > { %v745_v15 = vpop.xlane.xlu1 %744 }
 0x255   : > { %v746_v23 = vsub.f32 %v740_v1, %v745_v15  ;;  %v882_v1 = vld [vmem:[#allocation10 + $0x78] sm:$0xff] }
 0x257   : > { %v747_v25 = vmul.f32 1.442695, %v746_v23 }
 0x26c   : > { %v640_v21 = vpop.permute.xlu1 %639 }
 0x27b   : > { %v563_v14 = vpop.xlane.xlu0 %562 }
 0x27c   : > { %1189 = vrcp.f32 %v563_v14 }
 0x27d   : > { %1191 = vpow2.f32 %v747_v25 }
 0x282   : > { %v1190_v16 = vpop.eup %1189 }
 0x283   : > { %v565_v17 = vmul.f32 %v1190_v16, %v563_v14  ;;  %v1192_v28 = vpop.eup %1191 }
 0x284   : > { %v749_v29 = vsel %vm554_vm1, %v1192_v28, 0.0 }
 0x285   : > { %v566_v18 = vsub.f32 2.0, %v565_v17 }
 0x287   : > { %v567_v19 = vmul.f32 %v1190_v16, %v566_v18  ;;  %v1186_v18 = vld [vmem:[%s1749_s6] ss:$0 sm:$0xff] }
 0x289   : > { %v568_v20 = vmul.f32 %v1188_v6, %v567_v19 }
 0x28b   : > { %1081 = vmatmul.msk.f32.vlgmr.msrb.gmra.mxu3 %vm554_vm1, %v568_v20 }
 0x28c   : > { %660 = vmatpush.msrb.mxu3 %v640_v21 }
 0x28e   : > { %v814_v22 = vpop.permute.xlu0 %813 }
 0x28f   : > { %1091 = vmatpush.xpose.msk.msra.mxu0 %vm527_vm0, %v814_v22 }
 0x293   : > { %1083 = vmatmul.msk.f32.vlgmr.msra.gmra.mxu3 %vm527_vm0, %v597_v12  ;;  %v879_v12 = vld [vmem:[#allocation10 + $0x60] sm:$0xff] }
 0x294   : > { %684 = vmatpush.msra.mxu3 %v668_v56 }
 0x296   : > { %685 = vmatpush.msra.mxu3 %v667_v57 }
 0x298   : > { %686 = vmatpush.msra.mxu3 %v666_v58 }
 0x29a   : > { %687 = vmatpush.msra.mxu3 %v665_v60 }
 0x30e   : > { %v589_v24 = vpop.f32.mrf.mxu3 }
 0x30f   : > { %1086 = vmatmul.msk.f32.vlgmr.msrb.gmra.mxu0 %vm527_vm0, %v589_v24 }
 0x316   : > { %v621_v26 = vpop.f32.mrf.mxu3 }
 0x317   : > { %1092 = vmatmul.msk.f32.vlgmr.msra.gmra.mxu0 %vm527_vm0, %v812_v13  ;;  %v624_v27 = vsel %vm554_vm1, %v621_v26, -inf }
 0x318   : > { %625 = vmax.xlane.f32.xlu2 %v624_v27 }
 0x320   : > { %750 = vadd.xlane.f32.xlu2 %v749_v29 }
 0x38b   : > { %v626_v30 = vpop.xlane.xlu2 %625 }
 0x38c   : > { %v627_v31 = vsub.f32 %v621_v26, %v626_v30  ;;  %v1690_v32 = vpop.f32.mrf.mxu0 }
 0x38e   : > { %v628_v33 = vmul.f32 1.442695, %v627_v31 }
 0x390   : > { %1193 = vpow2.f32 %v628_v33 }
 0x393   : > { %v751_v38 = vpop.xlane.xlu2 %750 }
 0x394   : > { %v836_v34 = vpop.f32.mrf.mxu0  ;;  %1195 = vrcp.f32 %v751_v38 }
 0x395   : > { %v839_v35 = vsel %vm554_vm1, %v836_v34, -inf }
 0x396   : > { %v1194_v36 = vpop.eup %1193  ;;  %840 = vmax.xlane.f32.xlu0 %v839_v35 }
 0x397   : > { %v630_v37 = vsel %vm554_vm1, %v1194_v36, 0.0 }
 0x398   : > { %631 = vadd.xlane.f32.xlu2 %v630_v37 }
 0x39a   : > { %v1196_v43 = vpop.eup %1195 }
 0x39b   : > { %v753_v44 = vmul.f32 %v1196_v43, %v751_v38 }
 0x39d   : > { %v754_v48 = vsub.f32 2.0, %v753_v44 }
 0x39f   : > { %v755_v52 = vmul.f32 %v1196_v43, %v754_v48 }
 0x3a1   : > { %v756_v54 = vmul.f32 %v1192_v28, %v755_v52 }
 0x3aa   : > { %757 = vrot.lane.b32.xlu0 %v1672_v59, %s1435_s13 }
 0x409   : > { %v841_v39 = vpop.xlane.xlu0 %840 }
 0x40a   : > { %v842_v40 = vsub.f32 %v836_v34, %v841_v39 }
 0x40b   : > { %v632_v41 = vpop.xlane.xlu2 %631 }
 0x40c   : > { %v843_v42 = vmul.f32 1.442695, %v842_v40  ;;  %1197 = vrcp.f32 %v632_v41 }
 0x40e   : > { %1199 = vpow2.f32 %v843_v42 }
 0x412   : > { %v1198_v45 = vpop.eup %1197 }
 0x413   : > { %v634_v46 = vmul.f32 %v1198_v45, %v632_v41 }
 0x414   : > { %v1200_v47 = vpop.eup %1199 }
 0x415   : > { %v635_v49 = vsub.f32 2.0, %v634_v46  ;;  %v845_v50 = vsel %vm554_vm1, %v1200_v47, 0.0 }
 0x416   : > { %846 = vadd.xlane.f32.xlu2 %v845_v50 }
 0x417   : > { %v636_v51 = vmul.f32 %v1198_v45, %v635_v49 }
 0x419   : > { %v637_v53 = vmul.f32 %v1194_v36, %v636_v51 }
 0x41b   : > { %1084 = vmatmul.msk.f32.vlgmr.msrb.gmra.mxu3 %vm554_vm1, %v637_v53 }
 0x41c   : > { %v758_v55 = vpop.permute.xlu0 %757  ;;  %802 = vmatpush.msrb.mxu3 %v786_v61 }
 0x41d   : > { %778 = vmatpush.msrb.mxu2 %v758_v55 }
 0x41e   : > { %1089 = vmatmul.msk.f32.vlgmr.msrb.gmra.mxu2 %vm554_vm1, %v756_v54  ;;  %803 = vmatpush.msrb.mxu3 %v785_v62 }
 0x41f   : > { %898 = vmatpush.msra.mxu2 %v882_v1 }
 0x420   : > { %804 = vmatpush.msrb.mxu3 %v784_v63 }
 0x421   : > { %899 = vmatpush.msra.mxu2 %v881_v2 }
 0x422   : > { %805 = vmatpush.msrb.mxu3 %v783_v0 }
 0x423   : > { %900 = vmatpush.msra.mxu2 %v880_v3 }
 0x425   : > { %901 = vmatpush.msra.mxu2 %v879_v12 }
 0x42e   : > { %853 = vrot.lane.b32.xlu2 %v1672_v59, %s1437_s18 }
 0x489   : > { %v847_v59 = vpop.xlane.xlu2 %846 }
 0x48a   : > { %1201 = vrcp.f32 %v847_v59 }
 0x490   : > { %v1202_v4 = vpop.eup %1201 }
 0x491   : > { %v849_v5 = vmul.f32 %v1202_v4, %v847_v59  ;;  %v854_v6 = vpop.permute.xlu2 %853 }
 0x492   : > { %874 = vmatpush.msra.mxu1 %v854_v6 }
 0x493   : > { %v850_v7 = vsub.f32 2.0, %v849_v5 }
 0x495   : > { %v851_v8 = vmul.f32 %v1202_v4, %v850_v7 }
 0x497   : > { %v852_v9 = vmul.f32 %v1200_v47, %v851_v8 }
 0x499   : > { %1093 = vmatmul.msk.f32.vlgmr.msra.gmra.mxu1 %vm554_vm1, %v852_v9 }
 0x49e   : > { %v662_v10 = vpop.f32.mrf.mxu3 }
 0x49f   : > { %1085 = vmatmul.msk.f32.vlgmr.msra.gmra.mxu3 %vm527_vm0, %v662_v10 }
 0x4a1   : > { %v780_v11 = vpop.f32.mrf.mxu2 }
 0x4a7   : > { %1090 = vmatmul.msk.f32.vlgmr.msrb.gmra.mxu3 %vm527_vm0, %v780_v11 }
 0x516   : > { %v876_v13 = vpop.f32.mrf.mxu1 }
 0x517   : > { %1094 = vmatmul.msk.f32.vlgmr.msra.gmra.mxu2 %vm527_vm0, %v876_v13 }
 0x522   : > { %v689_v14 = vpop.f32.mrf.mxu3 }
 0x523   : > { %v713_v16 = vadd.f32 %v1690_v32, %v689_v14 }
 0x52a   : > { %v807_v15 = vpop.f32.mrf.mxu3 }
 0x52b   : > { %v810_v17 = vadd.f32 %v807_v15, %v713_v16 }
 0x59a   : > { %v903_v19 = vpop.f32.mrf.mxu2 }
 0x59b   : > { %v906_v20 = vadd.f32 %v903_v19, %v810_v17 }
 0x59d   : > { %v911_v21 = vadd.f32 %v1186_v18, %v906_v20 }
 0x59f   : > { %912 = vst [vmem:[%s403_s9] sm:$0xff] %v911_v21 }
 0x5a0   : > { %1380 = shalt.err (!%p1377_p10)
}
 0x5a1   : > { %1113 = dma.vmem_to_hbm [thread:$0]  (%p1544_p0), %s927_s16, 128, %s929_s30, %s914_s8  }
 0x5a2 PF: > { %s1776_s28 = sld [smem:[#allocation16_spill]] }
 0x5a3   : > { %s1778_s18 = sld [smem:[#allocation17_spill]] }
 0x5a8   : > { %s940_s3 = sand.u32 1, %s1776_s28  }
 0x5a9   : > { %p1779_p6 = scmp.ge.s32.totalorder %s1778_s18, 2  ;;  %s941_s19 = scalar_lea.sflag [#allocation4], %s940_s3 }
 0x5ab   : > { %p1133_p11 = pnand %p1779_p6, %p1550_p5 }
 0x5ad   : > { %p1134_p12 = pneg %p1133_p11 }
 0x5af   : > { %1410 = dma.done.wait (%p1134_p12), %s941_s19, 128  }
 0x5b0   : > { %1412 = vsyncadd (%p1134_p12), %s941_s19, 4294967168  ;;  %s1780_s27 = sld [smem:[#allocation18_spill]]  ;;  %s1782_s24 = smov %s1419_s25 }
 0x5b1   : > { %s1781_s22 = sld [smem:[#allocation19_spill]]  ;;  %s1783_s25 = smov %s1423_s26 }
 0x5b6   : > { %p24_p3 = scmp.ge.s32.totalorder %s1780_s27, 4  }
 0x5b7   : > { %s1784_s26 = smov %s1781_s22 }
 0x5b8   :  { %26 = sbr.rel (!%p24_p3) target bundleno = 11 (0xb), region = 125 }
 0x5bd   :  { %947 = vsyncpa [#allocation3], 1 }
 0x5be   :  { %949 = vsyncpa [#allocation3 + $0x1], 1 }
 0x5bf   :  { %950 = vsyncpa [#allocation6], 1 }
 0x5c0   :  { %952 = vsyncpa [#allocation6 + $0x1], 1 }
 0x5c1   :  { %953 = vsyncpa [#allocation9], 1 }
 0x5c2   :  { %954 = vsyncpa [#allocation4], 1 }
 0x5c3   :  { %956 = vsyncpa [#allocation4 + $0x1], 1 }

</bundles_post_ra>
